<compile_context>
chip_gen: v5e
topology: v5e:2x2
jax: 0.10.0
libtpu: 0.0.40
codegen_flags: <defaults>
</compile_context>

<pallas_src>
import jax
import jax.numpy as jnp
from jax.experimental import pallas as pl
from jax.experimental.pallas import tpu as pltpu


def _mini_pointnet_kernel(x_ref, w1_ref, b1_ref, w2_ref, b2_ref, o_ref):
    tm, S, C_in = x_ref.shape
    C_out = w1_ref.shape[1]

    # (tm, S, Cin) -> (tm*S, Cin): contiguous reshape; 1x1 conv == MXU matmul.
    x = x_ref[...].reshape(tm * S, C_in)

    # conv1 (+ folded bn1 scale) -> f32 accumulate -> bias + relu in f32.
    h = jnp.dot(x, w1_ref[...], preferred_element_type=jnp.float32)
    h = jnp.maximum(h + b1_ref[...], 0.0)

    # conv2 (+ folded bn2 scale): cast activations to the matmul dtype so the
    # second dot also runs at native MXU rate; accumulate in f32.
    z = jnp.dot(h.astype(w2_ref.dtype), w2_ref[...],
                preferred_element_type=jnp.float32)
    z = jnp.maximum(z + b2_ref[...], 0.0)

    # adaptive_max_pool1d(., 1): max over the S points of each group
    # (sublane reduction on the XLU; keep it as-is).
    o_ref[...] = z.reshape(tm, S, C_out).max(axis=1).astype(o_ref.dtype)


def _choose_tile_m(M, s, c, c_out, mm_itemsize,
                   vmem_budget=10 << 20, target_rows=512, min_grid=4):
    """Largest useful M-tile: >= target_rows rows per MXU call, fits VMEM,
    keeps spare grid steps for megacore sharding / pipelining."""
    def step_bytes(tm):
        return (2 * tm * s * c * mm_itemsize        # double-buffered x tile
                + 2 * tm * s * c_out * 4            # h, z f32 intermediates
                + 2 * tm * c_out * 4)               # double-buffered out tile

    divisors = [d for d in range(1, M + 1) if M % d == 0]
    fits = [d for d in divisors if step_bytes(d) <= vmem_budget] or [divisors[0]]

    # Smallest tile that already feeds the MXU; remaining parallelism stays in
    # the grid (TensorCore sharding + DMA overlap).
    fed = [d for d in fits if d * s >= target_rows]
    if fed:
        return fed[0]
    # M*s too small to reach the target: biggest tile that still leaves a few
    # grid steps, else just the biggest tile that fits.
    small = [d for d in fits if M // d >= min_grid]
    return (small or fits)[-1]


def mini_pointnet_forward(x, w1, bn1, w2, bn2, *, tile_m=None, eps=1e-5,
                          matmul_dtype=jnp.bfloat16):
    """x: (b, n, s, c) float32.  w1, w2: (Cout, Cin) conv weights (kernel_size=1).
    bn1/bn2: dicts with gamma, beta, mean, var (eval-mode BatchNorm1d)."""
    b, n, s, c = x.shape
    c_out = w1.shape[0]
    assert w1.shape[1] == c and w2.shape == (c_out, c_out)
    M = b * n

    # Glue (plain JAX): layout change + BN folding into the weights.
    def fold(w, bn):
        scale = bn["gamma"] / jnp.sqrt(bn["var"] + eps)                 # (Cout,)
        bias = bn["beta"] - bn["mean"] * scale                          # (Cout,)
        w_folded = (jnp.asarray(w).T * scale).astype(matmul_dtype)      # (Cin,Cout)
        return w_folded, bias.reshape(1, -1).astype(jnp.float32)

    w1f, b1 = fold(w1, bn1)
    w2f, b2 = fold(w2, bn2)
    x_msc = x.reshape(M, s, c).astype(matmul_dtype)                     # (M, S, C)

    if tile_m is None:
        tile_m = _choose_tile_m(M, s, c, c_out,
                                jnp.dtype(matmul_dtype).itemsize)
    assert M % tile_m == 0
    grid = (M // tile_m,)

    const = dict(pipeline_mode=pl.Buffered(1))   # constants: never re-fetched

    out = pl.pallas_call(
        _mini_pointnet_kernel,
        out_shape=jax.ShapeDtypeStruct((M, c_out), x.dtype),
        grid_spec=pltpu.PrefetchScalarGridSpec(
            num_scalar_prefetch=0,
            grid=grid,
            in_specs=[
                pl.BlockSpec((tile_m, s, c), lambda i: (i, 0, 0)),        # x tile
                pl.BlockSpec((c, c_out), lambda i: (0, 0), **const),      # w1 folded
                pl.BlockSpec((1, c_out), lambda i: (0, 0), **const),      # bias1
                pl.BlockSpec((c_out, c_out), lambda i: (0, 0), **const),  # w2 folded
                pl.BlockSpec((1, c_out), lambda i: (0, 0), **const),      # bias2
            ],
            out_specs=pl.BlockSpec((tile_m, c_out), lambda i: (i, 0)),
        ),
        compiler_params=pltpu.CompilerParams(
            dimension_semantics=("parallel",),
            vmem_limit_bytes=32 * 1024 * 1024,
        ),
    )(x_msc, w1f, b1, w2f, b2)

    return out.reshape(b, n, c_out)


def _reference(x, w1, bn1, w2, bn2, eps=1e-5):
    b, n, s, c = x.shape
    xm = x.reshape(b * n, s, c)

    def block(h, w, bn):
        h = jnp.einsum("msk,ok->mso", h, w)
        scale = bn["gamma"] / jnp.sqrt(bn["var"] + eps)
        bias = bn["beta"] - bn["mean"] * scale
        return jnp.maximum(h * scale + bias, 0.0)

    h = block(xm, w1, bn1)
    h = block(h, w2, bn2)
    return h.max(axis=1).reshape(b, n, -1)


if __name__ == "__main__":
    # Small shapes consistent with the module (in_channels == out_channels == 128),
    # big enough that the auto-tiler picks tile_m=64 -> 512 rows/step, grid=(4,).
    b, n, s, c = 2, 128, 8, 128
    key = jax.random.PRNGKey(0)
    kx, kw1, kw2, kg1, kb1, km1, kv1, kg2, kb2, km2, kv2 = jax.random.split(key, 11)

    x = jax.random.normal(kx, (b, n, s, c), dtype=jnp.float32)

    w1 = 0.05 * jax.random.normal(kw1, (c, c), dtype=jnp.float32)   # (Cout, Cin)
    w2 = 0.05 * jax.random.normal(kw2, (c, c), dtype=jnp.float32)

    # Deterministic eval-mode BatchNorm parameters (synthetic, not a checkpoint).
    bn1 = dict(gamma=1.0 + 0.1 * jax.random.normal(kg1, (c,), jnp.float32),
               beta=0.1 * jax.random.normal(kb1, (c,), jnp.float32),
               mean=0.1 * jax.random.normal(km1, (c,), jnp.float32),
               var=jnp.abs(jax.random.normal(kv1, (c,), jnp.float32)) + 0.5)
    bn2 = dict(gamma=1.0 + 0.1 * jax.random.normal(kg2, (c,), jnp.float32),
               beta=0.1 * jax.random.normal(kb2, (c,), jnp.float32),
               mean=0.1 * jax.random.normal(km2, (c,), jnp.float32),
               var=jnp.abs(jax.random.normal(kv2, (c,), jnp.float32)) + 0.5)

    ref = _reference(x, w1, bn1, w2, bn2)

    # Strict numeric check with f32 matmuls (structure / folding correctness).
    out_f32 = mini_pointnet_forward(x, w1, bn1, w2, bn2,
                                    matmul_dtype=jnp.float32)
    out_f32 = jax.block_until_ready(out_f32)
    assert out_f32.shape == (b, n, c), out_f32.shape
    assert jnp.allclose(out_f32, ref, atol=1e-4, rtol=1e-4), "f32 mismatch"

    # Default fast path: bf16 matmul inputs, f32 accumulation (looser tolerance).
    out_bf16 = mini_pointnet_forward(x, w1, bn1, w2, bn2)
    out_bf16 = jax.block_until_ready(out_bf16)
    assert out_bf16.shape == (b, n, c), out_bf16.shape
    assert jnp.allclose(out_bf16, ref, atol=5e-2, rtol=5e-2), "bf16 mismatch"

    print("KERNEL_OK")
</pallas_src>

<mosaic_0001>
module attributes {stable_mosaic.version = 11 : i64} {
  func.func @_mini_pointnet_kernel(%arg0: i32, %arg1: memref<64x8x128xf32, #tpu.memory_space<vmem>>, %arg2: memref<128x128xf32, #tpu.memory_space<vmem>>, %arg3: memref<1x128xf32, #tpu.memory_space<vmem>>, %arg4: memref<128x128xf32, #tpu.memory_space<vmem>>, %arg5: memref<1x128xf32, #tpu.memory_space<vmem>>, %arg6: memref<64x128xf32, #tpu.memory_space<vmem>>) attributes {dimension_semantics = [#tpu.dimension_semantics<parallel>], iteration_bounds = array<i64: 4>, scalar_prefetch = 0 : i64, scratch_operands = 0 : i64, tpu.core_type = #tpu.core_type<tc>, window_params = [{transform_indices = @transform_0, window_bounds = array<i64: 64, 8, 128>}, {pipeline_mode = #tpu.pipeline_mode<synchronous>, transform_indices = @transform_1, window_bounds = array<i64: 128, 128>}, {pipeline_mode = #tpu.pipeline_mode<synchronous>, transform_indices = @transform_2, window_bounds = array<i64: 1, 128>}, {pipeline_mode = #tpu.pipeline_mode<synchronous>, transform_indices = @transform_3, window_bounds = array<i64: 128, 128>}, {pipeline_mode = #tpu.pipeline_mode<synchronous>, transform_indices = @transform_4, window_bounds = array<i64: 1, 128>}, {transform_indices = @transform_5, window_bounds = array<i64: 64, 128>}]} {
    %c0 = arith.constant 0 : index
    %c0_0 = arith.constant 0 : index
    %c0_1 = arith.constant 0 : index
    %0 = vector.load %arg1[%c0, %c0_0, %c0_1] : memref<64x8x128xf32, #tpu.memory_space<vmem>>, vector<64x8x128xf32>
    %1 = vector.shape_cast %0 : vector<64x8x128xf32> to vector<512x128xf32>
    %c0_2 = arith.constant 0 : index
    %c0_3 = arith.constant 0 : index
    %2 = vector.load %arg2[%c0_2, %c0_3] : memref<128x128xf32, #tpu.memory_space<vmem>>, vector<128x128xf32>
    %cst = arith.constant dense<0.000000e+00> : vector<512x128xf32>
    %3 = tpu.matmul %1, %2, %cst {dimension_numbers = #tpu.dot_dimension_numbers<[1], [0], [0], [1], [0, 0, 1, 1], [], []>} : vector<512x128xf32>, vector<128x128xf32>, vector<512x128xf32> -> vector<512x128xf32>
    %c0_4 = arith.constant 0 : index
    %c0_5 = arith.constant 0 : index
    %4 = vector.load %arg3[%c0_4, %c0_5] : memref<1x128xf32, #tpu.memory_space<vmem>>, vector<1x128xf32>
    %5 = vector.broadcast %4 : vector<1x128xf32> to vector<512x128xf32>
    %6 = arith.addf %3, %5 : vector<512x128xf32>
    %cst_6 = arith.constant 0.000000e+00 : f32
    %7 = vector.broadcast %cst_6 : f32 to vector<512x128xf32>
    %8 = arith.maximumf %6, %7 : vector<512x128xf32>
    %c0_7 = arith.constant 0 : index
    %c0_8 = arith.constant 0 : index
    %9 = vector.load %arg4[%c0_7, %c0_8] : memref<128x128xf32, #tpu.memory_space<vmem>>, vector<128x128xf32>
    %cst_9 = arith.constant dense<0.000000e+00> : vector<512x128xf32>
    %10 = tpu.matmul %8, %9, %cst_9 {dimension_numbers = #tpu.dot_dimension_numbers<[1], [0], [0], [1], [0, 0, 1, 1], [], []>} : vector<512x128xf32>, vector<128x128xf32>, vector<512x128xf32> -> vector<512x128xf32>
    %c0_10 = arith.constant 0 : index
    %c0_11 = arith.constant 0 : index
    %11 = vector.load %arg5[%c0_10, %c0_11] : memref<1x128xf32, #tpu.memory_space<vmem>>, vector<1x128xf32>
    %12 = vector.broadcast %11 : vector<1x128xf32> to vector<512x128xf32>
    %13 = arith.addf %10, %12 : vector<512x128xf32>
    %cst_12 = arith.constant 0.000000e+00 : f32
    %14 = vector.broadcast %cst_12 : f32 to vector<512x128xf32>
    %15 = arith.maximumf %13, %14 : vector<512x128xf32>
    %16 = vector.shape_cast %15 : vector<512x128xf32> to vector<64x8x128xf32>
    %cst_13 = arith.constant dense<0xFF800000> : vector<64x128xf32>
    %17 = vector.multi_reduction <maximumf>, %16, %cst_13 [1] : vector<64x8x128xf32> to vector<64x128xf32>
    %c0_14 = arith.constant 0 : index
    %c0_15 = arith.constant 0 : index
    %18 = vector.load %arg6[%c0_14, %c0_15] : memref<64x128xf32, #tpu.memory_space<vmem>>, vector<64x128xf32>
    tpu.vector_store %arg6[%c0_14, %c0_15], %17 {strides = array<i32>} : memref<64x128xf32, #tpu.memory_space<vmem>>, vector<64x128xf32>,
    return
  }
  func.func @transform_0(%arg0: i32) -> (i32, i32, i32) {
    %c0_i32 = arith.constant 0 : i32
    %c0_i32_0 = arith.constant 0 : i32
    %c0_i32_1 = arith.constant 0 : i32
    return %arg0, %c0_i32, %c0_i32_0 : i32, i32, i32
  }
  func.func @transform_1(%arg0: i32) -> (i32, i32) {
    %c0_i32 = arith.constant 0 : i32
    %c0_i32_0 = arith.constant 0 : i32
    %c0_i32_1 = arith.constant 0 : i32
    return %c0_i32, %c0_i32_0 : i32, i32
  }
  func.func @transform_2(%arg0: i32) -> (i32, i32) {
    %c0_i32 = arith.constant 0 : i32
    %c0_i32_0 = arith.constant 0 : i32
    %c0_i32_1 = arith.constant 0 : i32
    return %c0_i32, %c0_i32_0 : i32, i32
  }
  func.func @transform_3(%arg0: i32) -> (i32, i32) {
    %c0_i32 = arith.constant 0 : i32
    %c0_i32_0 = arith.constant 0 : i32
    %c0_i32_1 = arith.constant 0 : i32
    return %c0_i32, %c0_i32_0 : i32, i32
  }
  func.func @transform_4(%arg0: i32) -> (i32, i32) {
    %c0_i32 = arith.constant 0 : i32
    %c0_i32_0 = arith.constant 0 : i32
    %c0_i32_1 = arith.constant 0 : i32
    return %c0_i32, %c0_i32_0 : i32, i32
  }
  func.func @transform_5(%arg0: i32) -> (i32, i32) {
    %c0_i32 = arith.constant 0 : i32
    %c0_i32_0 = arith.constant 0 : i32
    return %arg0, %c0_i32 : i32, i32
  }
}

</mosaic_0001>

<bundles_post_ra>
// kernel: tpu_custom_call.1
= control target key start
LH: loop header
LB: loop body
LE: loop exit
PB: predicated region body
PF: predicated region fallthrough
CT: control target
= control target key end

     0   :  { %10 = vsyncpa [#allocation3], 0  ;;  %s2337_s0 = inlined_call_operand.hbm [shape: f32[256,8,128], index: 0, kind: input, shape index: {}]   ;;  %s2338_s1 = inlined_call_operand.hbm [shape: f32[128,128], index: 1, kind: input, shape index: {}]   ;;  %s2339_s2 = inlined_call_operand.vmem [shape: f32[1,128], index: 2, kind: input, shape index: {}]   ;;  %s2340_s3 = inlined_call_operand.hbm [shape: f32[128,128], index: 3, kind: input, shape index: {}]   ;;  %s2341_s4 = inlined_call_operand.vmem [shape: f32[1,128], index: 4, kind: input, shape index: {}]   ;;  %s2342_s5 = inlined_call_operand.hbm [shape: f32[256,128], index: 5, kind: output, shape index: {}]  }
   0x1   :  { %12 = vsyncpa [#allocation3 + $0x1], 0 }
   0x2   :  { %13 = vsyncpa [#allocation6], 0 }
   0x3   :  { %14 = vsyncpa [#allocation4], 0 }
   0x4   :  { %16 = vsyncpa [#allocation4 + $0x1], 0  ;;  %s1890_s18 = smov 0   ;;  %s1892_s19 = smov 0  }
   0x5   :  { %s1894_s20 = smov 0   ;;  %s1896_s21 = smov 0  }
   0x6 LB: > { %s1911_s22 = sadd.s32 4294967295, %s1852_s21   ;;  %s1565_s23 = sadd.s32 4294967294, %s1852_s21   ;;  %s1852_s21 = sphi %s1896_s21, %s2353_s21   ;;  %s1848_s20 = sphi %s1894_s20, %s2352_s20   ;;  %s1844_s19 = sphi %s1892_s19, %s2351_s19   ;;  %s1840_s18 = sphi %s1890_s18, %s2350_s18  }
   0x7   : > { %p42_p0 = scmp.ne.s32.totalorder %s1844_s19, %s1840_s18  ;;  %p43_p1 = scmp.eq.s32.totalorder %s1911_s22, 0 }
   0x8   : > { %p150_p2 = scmp.eq.s32.totalorder %s1911_s22, 3  ;;  %p156_p3 = scmp.eq.s32.totalorder %s1565_s23, 3 }
   0x9   : > { %p1920_p4 = por %p43_p1, %p42_p0  ;;  %p1566_p5 = scmp.ge.s32.totalorder %s1852_s21, 1 }
   0xa   : > { %p1925_p6 = por %p156_p3, %p42_p0  ;;  %p163_p7 = scmp.lt.s32.totalorder %s1852_s21, 5 }
   0xb   : > { %s174_s28 = sshll.u32 %s2338_s1, 4  ;;  %s1854_s30 = smov [#allocation5]   ;;  %s175_s28 = int_to_ptr.hbm [resolvable:$true] %s174_s28 }
   0xc   : > { %p1933_p8 = pnand %p1566_p5, %p163_p7  ;;  %s176_s6 = sshll.u32 %s1854_s30, 4  ;;  %s177_s6 = int_to_ptr.vmem [resolvable:$true] %s176_s6 }
   0xd   : > { %s191_s9 = sshll.u32 %s2340_s3, 4  ;;  %s2343_s10 = smov 128   ;;  %s192_s9 = int_to_ptr.hbm [resolvable:$true] %s191_s9 }
   0xe   : > { %p1629_p9 = pneg %p1933_p8  ;;  %s1856_s11 = smov 8  }
   0xf   : > { %s1857_s12 = smov [#allocation7]   ;;  %s1951_s14 = sadd.s32 1, %s1852_s21  }
  0x10   : > { %p1630_p10 = pnand %p1629_p9, %p43_p1  ;;  %s193_s13 = sshll.u32 %s1857_s12, 4  ;;  %s194_s13 = int_to_ptr.vmem [resolvable:$true] %s193_s13 }
  0x11   : > { %s29_s15 = sadd.s32 1, %s1848_s20  ;;  %s26_s16 = ssub.s32 %s1852_s21, %s1951_s14 }
  0x12   : > { %1632 = dma.hbm_to_vmem [thread:$0]  (!%p1630_p10), %s175_s28, 2048, %s177_s6, [#allocation6], %s2343_s10, %s2343_s10, %s1856_s11  }
  0x13   : > { %1635 = dma.hbm_to_vmem [thread:$0]  (!%p1630_p10), %s192_s9, 2048, %s194_s13, [#allocation6], %s2343_s10, %s2343_s10, %s1856_s11  }
  0x14   : > { %p36_p11 = scmp.ne.s32.totalorder %s1848_s20, %s1844_s19  ;;  %p27_p12 = scmp.eq.s32.totalorder %s26_s16, 0 }
  0x15   : > { %p37_p13 = scmp.eq.s32.totalorder %s1852_s21, 0  ;;  %p1646_p3 = scmp.lt.s32.totalorder %s1852_s21, 4 }
  0x16   : > { %p1961_p0 = por %p150_p2, %p36_p11  ;;  %s210_s26 = sand.u32 1, %s1848_s20  }
  0x17   : > { %s1967_s23 = scalar_select %p27_p12, %s1848_s20, %s29_s15  }
  0x18   : > { %p38_p5 = por %p37_p13, %p36_p11  ;;  %s1570_s27 = sshll.u32 %s210_s26, 9 }
  0x19   : > { %s1583_s28 = sshll.u32 %s1852_s21, 9  ;;  %s214_s8 = scalar_lea.vmem [#allocation2], %s1570_s27 }
  0x1a   : > { %s219_s7 = scalar_lea.hbm %s2337_s0, %s1583_s28  ;;  %s222_s9 = sshll.u32 %s214_s8, 4  ;;  %s223_s9 = int_to_ptr.vmem [resolvable:$true] %s222_s9 }
  0x1b   : > { %s220_s12 = sshll.u32 %s219_s7, 4  ;;  %p1974_p2 = pnand %p1646_p3, %p38_p5  ;;  %s221_s12 = int_to_ptr.hbm [resolvable:$true] %s220_s12 }
  0x1c   : > { %s211_s15 = scalar_lea.sflag [#allocation3], %s210_s26  ;;  %s1752_s16 = sshra.s32 %s221_s12, 4  ;;  %s1753_s16 = int_to_ptr.hbm [resolvable:$true] %s1752_s16 }
  0x1d   : > { %s1754_s10 = scalar_lea.hbm %s1753_s16, 512  ;;  %p1756_p9 = pneg %p1974_p2 }
  0x1e   : > { %p1755_p7 = scmp.ne.s32.totalorder %s1753_s16, %s1754_s10  ;;  %s1759_s30 = scalar_lea.hbm %s2337_s0, 2048 }
  0x1f   : > { %p1760_p12 = scmp.lt.s32.totalorder %s1753_s16, %s2337_s0  ;;  %p1761_p13 = scmp.lt.s32.totalorder %s1759_s30, %s1754_s10 }
  0x20   : > { %p1757_p10 = pnand %p1756_p9, %p1755_p7 }
  0x21   : > { %p1762_p3 = por %p1761_p13, %p1760_p12 }
  0x22   : > { %p1758_p11 = pneg %p1757_p10 }
  0x24   : > { %p1763_p5 = pnand %p1762_p3, %p1758_p11 }
  0x26   : > { %1766 = shalt.err (!%p1763_p5)
}
  0x27   : > { %s2349_s26 = smov 128   ;;  %234 = sbr.rel (%p1933_p8) target bundleno = 617 (0x269), region = 40 }
  0x28   : > { %1639 = dma.hbm_to_vmem [thread:$0]  (!%p1974_p2), %s221_s12, 8192, %s223_s9, %s211_s15, %s2349_s26, %s2349_s26, %s1856_s11  }
  0x29   : > { %s1994_s8 = sand.u32 (!%p1933_p8), 1, %s1844_s19  }
  0x2a   : > { %s1574_s16 = sshll.u32 (!%p1933_p8), %s1994_s8, 9  ;;  %s237_s10 = scalar_lea.sflag (!%p1933_p8), [#allocation3], %s1994_s8 }
  0x2b   : > { %s1998_s28 = scalar_lea.vmem (!%p1933_p8), [#allocation2], %s1574_s16 }
  0x2c   : > { %1827 = dma.done.wait (%p1920_p4), %s237_s10, 8192  }
  0x2d   : > { %1829 = vsyncadd (%p1920_p4), %s237_s10, 4294959104 }
  0x2e   : > { %1831 = dma.done.wait (%p43_p1), [#allocation6], 4096  }
  0x2f   : > { %1833 = vsyncadd (%p43_p1), [#allocation6], 4294963200  ;;  %v359_v0 = vld [vmem:[#allocation5 + $0x78] sm:$0xff]  ;;  %v358_v1 = vld [vmem:[#allocation5 + $0x70] sm:$0xff]  ;;  %vm1378_vm0 = vcmask 1041409   ;;  %vm1380_vm1 = vcmask 1042434  }
  0x30   : > { %364 = vmatpush.msra.mxu0 %v359_v0  ;;  %1585 = vmatpush.msra.mxu2 %v359_v0  ;;  %v357_v2 = vld [vmem:[#allocation5 + $0x68] sm:$0xff]  ;;  %v356_v3 = vld [vmem:[#allocation5 + $0x60] sm:$0xff]  ;;  %v355_v4 = vld [vmem:[#allocation5 + $0x58] sm:$0xff]  ;;  %vm1382_vm2 = vcmask 1043459   ;;  %vm1384_vm3 = vcmask 1044484   ;;  %vm1386_vm4 = vcmask 1045509  }
  0x31   : > { %v354_v5 = vld [vmem:[#allocation5 + $0x50] sm:$0xff]  ;;  %v353_v6 = vld [vmem:[#allocation5 + $0x48] sm:$0xff]  ;;  %v352_v7 = vld [vmem:[#allocation5 + $0x40] sm:$0xff]  ;;  %vm1388_vm5 = vcmask 1046534   ;;  %s1577_s12 = sshll.u32 %s1994_s8, 6  ;;  %vm1390_vm6 = vcmask 1047559  }
  0x32   : > { %365 = vmatpush.msra.mxu0 %v358_v1  ;;  %1586 = vmatpush.msra.mxu2 %v358_v1  ;;  %v351_v8 = vld [vmem:[#allocation5 + $0x38] sm:$0xff]  ;;  %v350_v9 = vld [vmem:[#allocation5 + $0x30] sm:$0xff]  ;;  %v349_v10 = vld [vmem:[#allocation5 + $0x28] sm:$0xff]  ;;  %s2164_s13 = scalar_lea.vmem [#allocation8], %s1577_s12  ;;  %s1584_s7 = sshll.u32 %s1911_s22, 6 }
  0x33   : > { %v348_v11 = vld [vmem:[#allocation5 + $0x20] sm:$0xff]  ;;  %v347_v12 = vld [vmem:[#allocation5 + $0x18] sm:$0xff]  ;;  %v346_v13 = vld [vmem:[#allocation5 + $0x10] sm:$0xff]  ;;  %s1469_s10 = scalar_lea.hbm %s2342_s5, %s1584_s7  ;;  %s1470_s22 = sshll.u32 %s2164_s13, 4  ;;  %s1471_s22 = int_to_ptr.vmem [resolvable:$true] %s1470_s22 }
  0x34   : > { %366 = vmatpush.msra.mxu0 %v357_v2  ;;  %1587 = vmatpush.msra.mxu2 %v357_v2  ;;  %v345_v14 = vld [vmem:[#allocation5 + $0x8] sm:$0xff]  ;;  %v344_v15 = vld [vmem:[#allocation5] sm:$0xff]  ;;  %v282_v20 = vld [vmem:[%s1998_s28 + $0x10] sm:$0xff]  ;;  %s1458_s24 = scalar_lea.sflag [#allocation4], %s1994_s8  ;;  %s1802_s15 = scalar_lea.hbm %s2342_s5, 256 }
  0x35   : > { %v280_v16 = vld [vmem:[%s1998_s28] sm:$0xff]  ;;  %v281_v18 = vld [vmem:[%s1998_s28 + $0x8] sm:$0xff]  ;;  %v314_v21 = vld [vmem:[%s1998_s28 + $0x110] sm:$0xff] }
  0x36   : > { %367 = vmatpush.msra.mxu0 %v356_v3  ;;  %1588 = vmatpush.msra.mxu2 %v356_v3  ;;  %v312_v17 = vld [vmem:[%s1998_s28 + $0x100] sm:$0xff]  ;;  %v313_v19 = vld [vmem:[%s1998_s28 + $0x108] sm:$0xff]  ;;  %v283_v22 = vld [vmem:[%s1998_s28 + $0x18] sm:$0xff] }
  0x37   : > { %v315_v23 = vld [vmem:[%s1998_s28 + $0x118] sm:$0xff]  ;;  %v284_v24 = vld [vmem:[%s1998_s28 + $0x20] sm:$0xff]  ;;  %v285_v26 = vld [vmem:[%s1998_s28 + $0x28] sm:$0xff] }
  0x38   : > { %368 = vmatpush.msra.mxu0 %v355_v4  ;;  %1589 = vmatpush.msra.mxu2 %v355_v4  ;;  %v316_v25 = vld [vmem:[%s1998_s28 + $0x120] sm:$0xff]  ;;  %v317_v27 = vld [vmem:[%s1998_s28 + $0x128] sm:$0xff]  ;;  %v286_v28 = vld [vmem:[%s1998_s28 + $0x30] sm:$0xff] }
  0x39   : > { %v318_v29 = vld [vmem:[%s1998_s28 + $0x130] sm:$0xff]  ;;  %v287_v30 = vld [vmem:[%s1998_s28 + $0x38] sm:$0xff]  ;;  %v288_v32 = vld [vmem:[%s1998_s28 + $0x40] sm:$0xff] }
  0x3a   : > { %369 = vmatpush.msra.mxu0 %v354_v5  ;;  %1590 = vmatpush.msra.mxu2 %v354_v5  ;;  %v319_v31 = vld [vmem:[%s1998_s28 + $0x138] sm:$0xff]  ;;  %v320_v33 = vld [vmem:[%s1998_s28 + $0x140] sm:$0xff]  ;;  %v651_v35 = vld [vmem:[#allocation7 + $0x70] sm:$0xff] }
  0x3b   : > { %v652_v34 = vld [vmem:[#allocation7 + $0x78] sm:$0xff]  ;;  %v650_v36 = vld [vmem:[#allocation7 + $0x68] sm:$0xff]  ;;  %v649_v39 = vld [vmem:[#allocation7 + $0x60] sm:$0xff] }
  0x3c   : > { %370 = vmatpush.msra.mxu0 %v353_v6  ;;  %1591 = vmatpush.msra.mxu2 %v353_v6  ;;  %v289_v37 = vld [vmem:[%s1998_s28 + $0x48] sm:$0xff]  ;;  %v648_v40 = vld [vmem:[#allocation7 + $0x58] sm:$0xff]  ;;  %v647_v41 = vld [vmem:[#allocation7 + $0x50] sm:$0xff] }
  0x3d   : > { %657 = vmatpush.msra.mxu1 %v652_v34  ;;  %1601 = vmatpush.msra.mxu3 %v652_v34  ;;  %v321_v38 = vld [vmem:[%s1998_s28 + $0x148] sm:$0xff]  ;;  %v290_v43 = vld [vmem:[%s1998_s28 + $0x50] sm:$0xff]  ;;  %v645_v45 = vld [vmem:[#allocation7 + $0x40] sm:$0xff] }
  0x3e   : > { %371 = vmatpush.msra.mxu0 %v352_v7  ;;  %1592 = vmatpush.msra.mxu2 %v352_v7  ;;  %v646_v42 = vld [vmem:[#allocation7 + $0x48] sm:$0xff]  ;;  %v322_v44 = vld [vmem:[%s1998_s28 + $0x150] sm:$0xff]  ;;  %v644_v46 = vld [vmem:[#allocation7 + $0x38] sm:$0xff] }
  0x3f   : > { %658 = vmatpush.msra.mxu1 %v651_v35  ;;  %1602 = vmatpush.msra.mxu3 %v651_v35  ;;  %v643_v47 = vld [vmem:[#allocation7 + $0x30] sm:$0xff]  ;;  %v642_v48 = vld [vmem:[#allocation7 + $0x28] sm:$0xff]  ;;  %v291_v49 = vld [vmem:[%s1998_s28 + $0x58] sm:$0xff] }
  0x40   : > { %372 = vmatpush.msra.mxu0 %v351_v8  ;;  %1593 = vmatpush.msra.mxu2 %v351_v8  ;;  %v323_v50 = vld [vmem:[%s1998_s28 + $0x158] sm:$0xff]  ;;  %v641_v51 = vld [vmem:[#allocation7 + $0x20] sm:$0xff]  ;;  %v639_v53 = vld [vmem:[#allocation7 + $0x10] sm:$0xff] }
  0x41   : > { %659 = vmatpush.msra.mxu1 %v650_v36  ;;  %1603 = vmatpush.msra.mxu3 %v650_v36  ;;  %v640_v52 = vld [vmem:[#allocation7 + $0x18] sm:$0xff]  ;;  %v292_v54 = vld [vmem:[%s1998_s28 + $0x60] sm:$0xff]  ;;  %v638_v56 = vld [vmem:[#allocation7 + $0x8] sm:$0xff] }
  0x42   : > { %373 = vmatpush.msra.mxu0 %v350_v9  ;;  %1594 = vmatpush.msra.mxu2 %v350_v9  ;;  %v324_v55 = vld [vmem:[%s1998_s28 + $0x160] sm:$0xff]  ;;  %v293_v58 = vld [vmem:[%s1998_s28 + $0x68] sm:$0xff]  ;;  %v294_v60 = vld [vmem:[%s1998_s28 + $0x70] sm:$0xff] }
  0x43   : > { %660 = vmatpush.msra.mxu1 %v649_v39  ;;  %1604 = vmatpush.msra.mxu3 %v649_v39  ;;  %v637_v57 = vld [vmem:[#allocation7] sm:$0xff]  ;;  %v325_v59 = vld [vmem:[%s1998_s28 + $0x168] sm:$0xff]  ;;  %v326_v61 = vld [vmem:[%s1998_s28 + $0x170] sm:$0xff] }
  0x44   : > { %374 = vmatpush.msra.mxu0 %v349_v10  ;;  %1595 = vmatpush.msra.mxu2 %v349_v10  ;;  %v295_v62 = vld [vmem:[%s1998_s28 + $0x78] sm:$0xff]  ;;  %v2043_v0 = vld [vmem:[%s2339_s2] ss:$0 sm:$0xff]  ;;  %v297_v9 = vld [vmem:[%s1998_s28 + $0x88] sm:$0xff] }
  0x45   : > { %661 = vmatpush.msra.mxu1 %v648_v40  ;;  %1605 = vmatpush.msra.mxu3 %v648_v40  ;;  %v327_v63 = vld [vmem:[%s1998_s28 + $0x178] sm:$0xff]  ;;  %v296_v2 = vld [vmem:[%s1998_s28 + $0x80] sm:$0xff]  ;;  %v329_v10 = vld [vmem:[%s1998_s28 + $0x188] sm:$0xff] }
  0x46   : > { %375 = vmatpush.msra.mxu0 %v348_v11  ;;  %1596 = vmatpush.msra.mxu2 %v348_v11  ;;  %v328_v3 = vld [vmem:[%s1998_s28 + $0x180] sm:$0xff] }
  0x47   : > { %662 = vmatpush.msra.mxu1 %v647_v41  ;;  %1606 = vmatpush.msra.mxu3 %v647_v41  ;;  %v332_v34 = vld [vmem:[%s1998_s28 + $0x1a0] sm:$0xff]  ;;  %v301_v41 = vld [vmem:[%s1998_s28 + $0xa8] sm:$0xff] }
  0x48   : > { %376 = vmatpush.msra.mxu0 %v347_v12  ;;  %1597 = vmatpush.msra.mxu2 %v347_v12 }
  0x49   : > { %663 = vmatpush.msra.mxu1 %v646_v42  ;;  %1607 = vmatpush.msra.mxu3 %v646_v42  ;;  %v333_v42 = vld [vmem:[%s1998_s28 + $0x1a8] sm:$0xff] }
  0x4a   : > { %377 = vmatpush.msra.mxu0 %v346_v13  ;;  %1598 = vmatpush.msra.mxu2 %v346_v13 }
  0x4b   : > { %664 = vmatpush.msra.mxu1 %v645_v45  ;;  %1608 = vmatpush.msra.mxu3 %v645_v45 }
  0x4c   : > { %378 = vmatpush.msra.mxu0 %v345_v14  ;;  %1599 = vmatpush.msra.mxu2 %v345_v14 }
  0x4d   : > { %665 = vmatpush.msra.mxu1 %v644_v46  ;;  %1609 = vmatpush.msra.mxu3 %v644_v46 }
  0x4e   : > { %379 = vmatpush.msra.mxu0 %v344_v15  ;;  %1600 = vmatpush.msra.mxu2 %v344_v15 }
  0x4f   : > { %380 = vmatmul.f32.vlgmr.msra.gmra.mxu0 %v280_v16  ;;  %476 = vmatmul.f32.vlgmr.msra.gmra.mxu2 %v312_v17  ;;  %v298_v17 = vld [vmem:[%s1998_s28 + $0x90] sm:$0xff] }
  0x50   : > { %666 = vmatpush.msra.mxu1 %v643_v47  ;;  %1610 = vmatpush.msra.mxu3 %v643_v47 }
  0x52   : > { %667 = vmatpush.msra.mxu1 %v642_v48  ;;  %1611 = vmatpush.msra.mxu3 %v642_v48 }
  0x54   : > { %668 = vmatpush.msra.mxu1 %v641_v51  ;;  %1612 = vmatpush.msra.mxu3 %v641_v51 }
  0x56   : > { %669 = vmatpush.msra.mxu1 %v640_v52  ;;  %1613 = vmatpush.msra.mxu3 %v640_v52 }
  0x57   : > { %383 = vmatmul.f32.gmra.mxu0 %v281_v18  ;;  %479 = vmatmul.f32.gmra.mxu2 %v313_v19  ;;  %v330_v18 = vld [vmem:[%s1998_s28 + $0x190] sm:$0xff] }
  0x58   : > { %670 = vmatpush.msra.mxu1 %v639_v53  ;;  %1614 = vmatpush.msra.mxu3 %v639_v53 }
  0x5a   : > { %671 = vmatpush.msra.mxu1 %v638_v56  ;;  %1615 = vmatpush.msra.mxu3 %v638_v56 }
  0x5c   : > { %672 = vmatpush.msra.mxu1 %v637_v57  ;;  %1616 = vmatpush.msra.mxu3 %v637_v57  ;;  %v303_v57 = vld [vmem:[%s1998_s28 + $0xb8] sm:$0xff] }
  0x5f   : > { %386 = vmatmul.f32.gmra.mxu0 %v282_v20  ;;  %482 = vmatmul.f32.gmra.mxu2 %v314_v21 }
  0x67   : > { %389 = vmatmul.f32.gmra.mxu0 %v283_v22  ;;  %485 = vmatmul.f32.gmra.mxu2 %v315_v23 }
  0x6f   : > { %392 = vmatmul.f32.gmra.mxu0 %v284_v24  ;;  %488 = vmatmul.f32.gmra.mxu2 %v316_v25  ;;  %v299_v25 = vld [vmem:[%s1998_s28 + $0x98] sm:$0xff] }
  0x77   : > { %395 = vmatmul.f32.gmra.mxu0 %v285_v26  ;;  %491 = vmatmul.f32.gmra.mxu2 %v317_v27  ;;  %v331_v26 = vld [vmem:[%s1998_s28 + $0x198] sm:$0xff] }
  0x7f   : > { %398 = vmatmul.f32.gmra.mxu0 %v286_v28  ;;  %494 = vmatmul.f32.gmra.mxu2 %v318_v29 }
  0x87   : > { %401 = vmatmul.f32.gmra.mxu0 %v287_v30  ;;  %497 = vmatmul.f32.gmra.mxu2 %v319_v31 }
  0x8f   : > { %404 = vmatmul.f32.gmra.mxu0 %v288_v32  ;;  %500 = vmatmul.f32.gmra.mxu2 %v320_v33  ;;  %v300_v33 = vld [vmem:[%s1998_s28 + $0xa0] sm:$0xff] }
  0x97   : > { %407 = vmatmul.f32.gmra.mxu0 %v289_v37  ;;  %503 = vmatmul.f32.gmra.mxu2 %v321_v38 }
  0x9f   : > { %410 = vmatmul.f32.gmra.mxu0 %v290_v43  ;;  %506 = vmatmul.f32.gmra.mxu2 %v322_v44 }
  0xa7   : > { %413 = vmatmul.f32.gmra.mxu0 %v291_v49  ;;  %509 = vmatmul.f32.gmra.mxu2 %v323_v50  ;;  %v302_v49 = vld [vmem:[%s1998_s28 + $0xb0] sm:$0xff] }
  0xa8   : > { %v334_v50 = vld [vmem:[%s1998_s28 + $0x1b0] sm:$0xff] }
  0xaf   : > { %416 = vmatmul.f32.gmra.mxu0 %v292_v54  ;;  %512 = vmatmul.f32.gmra.mxu2 %v324_v55 }
  0xb7   : > { %419 = vmatmul.f32.gmra.mxu0 %v293_v58  ;;  %515 = vmatmul.f32.gmra.mxu2 %v325_v59  ;;  %v335_v58 = vld [vmem:[%s1998_s28 + $0x1b8] sm:$0xff] }
  0xbf   : > { %422 = vmatmul.f32.gmra.mxu0 %v294_v60  ;;  %518 = vmatmul.f32.gmra.mxu2 %v326_v61 }
  0xc7   : > { %425 = vmatmul.f32.gmra.mxu0 %v295_v62  ;;  %521 = vmatmul.f32.gmra.mxu2 %v327_v63 }
  0xcc   : > { %v381_v1 = vpop.f32.mrf.mxu0 }
  0xcd   : > { %v382_v4 = vadd.f32 %v2043_v0, %v381_v1 }
  0xcf   : > { %428 = vmatmul.f32.gmra.mxu0 %v296_v2  ;;  %524 = vmatmul.f32.gmra.mxu2 %v328_v3  ;;  %v573_v5 = vmax.f32 %v382_v4, 0.0  ;;  %v304_v2 = vld [vmem:[%s1998_s28 + $0xc0] sm:$0xff] }
  0xd0   : > { %v336_v3 = vld [vmem:[%s1998_s28 + $0x1c0] sm:$0xff] }
  0xd1   : > { %673 = vmatmul.f32.vlgmr.msra.gmra.mxu1 %v573_v5 }
  0xd2   : > { %v477_v6 = vpop.f32.mrf.mxu2 }
  0xd3   : > { %v478_v7 = vadd.f32 %v2043_v0, %v477_v6 }
  0xd4   : > { %v384_v8 = vpop.f32.mrf.mxu0 }
  0xd5   : > { %v385_v11 = vadd.f32 %v2043_v0, %v384_v8  ;;  %v605_v12 = vmax.f32 %v478_v7, 0.0 }
  0xd7   : > { %431 = vmatmul.f32.gmra.mxu0 %v297_v9  ;;  %527 = vmatmul.f32.gmra.mxu2 %v329_v10  ;;  %v574_v13 = vmax.f32 %v385_v11, 0.0  ;;  %v305_v10 = vld [vmem:[%s1998_s28 + $0xc8] sm:$0xff] }
  0xd8   : > { %769 = vmatmul.f32.vlgmr.msra.gmra.mxu3 %v605_v12  ;;  %v337_v11 = vld [vmem:[%s1998_s28 + $0x1c8] sm:$0xff] }
  0xd9   : > { %676 = vmatmul.f32.gmra.mxu1 %v574_v13 }
  0xda   : > { %v480_v14 = vpop.f32.mrf.mxu2 }
  0xdb   : > { %v481_v15 = vadd.f32 %v2043_v0, %v480_v14 }
  0xdc   : > { %v387_v16 = vpop.f32.mrf.mxu0 }
  0xdd   : > { %v388_v19 = vadd.f32 %v2043_v0, %v387_v16  ;;  %v606_v20 = vmax.f32 %v481_v15, 0.0 }
  0xdf   : > { %434 = vmatmul.f32.gmra.mxu0 %v298_v17  ;;  %530 = vmatmul.f32.gmra.mxu2 %v330_v18  ;;  %v575_v21 = vmax.f32 %v388_v19, 0.0  ;;  %v306_v18 = vld [vmem:[%s1998_s28 + $0xd0] sm:$0xff] }
  0xe0   : > { %772 = vmatmul.f32.gmra.mxu3 %v606_v20  ;;  %v338_v19 = vld [vmem:[%s1998_s28 + $0x1d0] sm:$0xff] }
  0xe1   : > { %679 = vmatmul.f32.gmra.mxu1 %v575_v21 }
  0xe2   : > { %v483_v22 = vpop.f32.mrf.mxu2 }
  0xe3   : > { %v484_v23 = vadd.f32 %v2043_v0, %v483_v22 }
  0xe4   : > { %v390_v24 = vpop.f32.mrf.mxu0 }
  0xe5   : > { %v391_v27 = vadd.f32 %v2043_v0, %v390_v24  ;;  %v607_v28 = vmax.f32 %v484_v23, 0.0 }
  0xe7   : > { %437 = vmatmul.f32.gmra.mxu0 %v299_v25  ;;  %533 = vmatmul.f32.gmra.mxu2 %v331_v26  ;;  %v576_v29 = vmax.f32 %v391_v27, 0.0  ;;  %v307_v26 = vld [vmem:[%s1998_s28 + $0xd8] sm:$0xff] }
  0xe8   : > { %775 = vmatmul.f32.gmra.mxu3 %v607_v28  ;;  %v339_v27 = vld [vmem:[%s1998_s28 + $0x1d8] sm:$0xff] }
  0xe9   : > { %682 = vmatmul.f32.gmra.mxu1 %v576_v29 }
  0xea   : > { %v486_v30 = vpop.f32.mrf.mxu2 }
  0xeb   : > { %v487_v31 = vadd.f32 %v2043_v0, %v486_v30 }
  0xec   : > { %v393_v32 = vpop.f32.mrf.mxu0 }
  0xed   : > { %v394_v35 = vadd.f32 %v2043_v0, %v393_v32  ;;  %v608_v36 = vmax.f32 %v487_v31, 0.0 }
  0xef   : > { %440 = vmatmul.f32.gmra.mxu0 %v300_v33  ;;  %536 = vmatmul.f32.gmra.mxu2 %v332_v34  ;;  %v577_v37 = vmax.f32 %v394_v35, 0.0  ;;  %v308_v34 = vld [vmem:[%s1998_s28 + $0xe0] sm:$0xff] }
  0xf0   : > { %778 = vmatmul.f32.gmra.mxu3 %v608_v36  ;;  %v340_v35 = vld [vmem:[%s1998_s28 + $0x1e0] sm:$0xff] }
  0xf1   : > { %685 = vmatmul.f32.gmra.mxu1 %v577_v37 }
  0xf2   : > { %v489_v38 = vpop.f32.mrf.mxu2 }
  0xf3   : > { %v490_v39 = vadd.f32 %v2043_v0, %v489_v38 }
  0xf4   : > { %v396_v40 = vpop.f32.mrf.mxu0 }
  0xf5   : > { %v397_v43 = vadd.f32 %v2043_v0, %v396_v40  ;;  %v609_v44 = vmax.f32 %v490_v39, 0.0 }
  0xf7   : > { %443 = vmatmul.f32.gmra.mxu0 %v301_v41  ;;  %539 = vmatmul.f32.gmra.mxu2 %v333_v42  ;;  %v578_v45 = vmax.f32 %v397_v43, 0.0  ;;  %v309_v42 = vld [vmem:[%s1998_s28 + $0xe8] sm:$0xff] }
  0xf8   : > { %781 = vmatmul.f32.gmra.mxu3 %v609_v44  ;;  %v341_v43 = vld [vmem:[%s1998_s28 + $0x1e8] sm:$0xff] }
  0xf9   : > { %688 = vmatmul.f32.gmra.mxu1 %v578_v45 }
  0xfa   : > { %v492_v46 = vpop.f32.mrf.mxu2 }
  0xfb   : > { %v493_v47 = vadd.f32 %v2043_v0, %v492_v46 }
  0xfc   : > { %v399_v48 = vpop.f32.mrf.mxu0 }
  0xfd   : > { %v400_v51 = vadd.f32 %v2043_v0, %v399_v48  ;;  %v610_v52 = vmax.f32 %v493_v47, 0.0 }
  0xff   : > { %446 = vmatmul.f32.gmra.mxu0 %v302_v49  ;;  %542 = vmatmul.f32.gmra.mxu2 %v334_v50  ;;  %v579_v53 = vmax.f32 %v400_v51, 0.0  ;;  %v310_v50 = vld [vmem:[%s1998_s28 + $0xf0] sm:$0xff] }
 0x100   : > { %784 = vmatmul.f32.gmra.mxu3 %v610_v52  ;;  %v342_v51 = vld [vmem:[%s1998_s28 + $0x1f0] sm:$0xff] }
 0x101   : > { %691 = vmatmul.f32.gmra.mxu1 %v579_v53 }
 0x102   : > { %v495_v54 = vpop.f32.mrf.mxu2 }
 0x103   : > { %v496_v55 = vadd.f32 %v2043_v0, %v495_v54 }
 0x104   : > { %v402_v56 = vpop.f32.mrf.mxu0 }
 0x105   : > { %v403_v59 = vadd.f32 %v2043_v0, %v402_v56  ;;  %v611_v60 = vmax.f32 %v496_v55, 0.0 }
 0x107   : > { %449 = vmatmul.f32.gmra.mxu0 %v303_v57  ;;  %545 = vmatmul.f32.gmra.mxu2 %v335_v58  ;;  %v580_v61 = vmax.f32 %v403_v59, 0.0  ;;  %v311_v58 = vld [vmem:[%s1998_s28 + $0xf8] sm:$0xff] }
 0x108   : > { %787 = vmatmul.f32.gmra.mxu3 %v611_v60  ;;  %v343_v59 = vld [vmem:[%s1998_s28 + $0x1f8] sm:$0xff]  ;;  %s1472_s28 = sshll.u32 %s1469_s10, 4  ;;  %s1473_s28 = int_to_ptr.hbm [resolvable:$true] %s1472_s28 }
 0x109   : > { %694 = vmatmul.f32.gmra.mxu1 %v580_v61  ;;  %s1796_s29 = sshra.s32 %s1473_s28, 4  ;;  %s1797_s29 = int_to_ptr.hbm [resolvable:$true] %s1796_s29 }
 0x10a   : > { %v498_v62 = vpop.f32.mrf.mxu2  ;;  %s1798_s11 = scalar_lea.hbm %s1797_s29, 64  ;;  %p1803_p2 = scmp.lt.s32.totalorder %s1797_s29, %s2342_s5 }
 0x10b   : > { %v499_v63 = vadd.f32 %v2043_v0, %v498_v62  ;;  %p1799_p1 = scmp.ne.s32.totalorder %s1797_s29, %s1798_s11  ;;  %p1804_p7 = scmp.lt.s32.totalorder %s1802_s15, %s1798_s11 }
 0x10c   : > { %v405_v1 = vpop.f32.mrf.mxu0 }
 0x10d   : > { %v406_v4 = vadd.f32 %v2043_v0, %v405_v1  ;;  %v612_v5 = vmax.f32 %v499_v63, 0.0  ;;  %p1800_p4 = pnand %p1799_p1, %p1961_p0  ;;  %p1805_p9 = por %p1804_p7, %p1803_p2 }
 0x10f   : > { %v581_v6 = vmax.f32 %v406_v4, 0.0  ;;  %452 = vmatmul.f32.gmra.mxu0 %v304_v2  ;;  %548 = vmatmul.f32.gmra.mxu2 %v336_v3  ;;  %p1801_p8 = pneg %p1800_p4 }
 0x110   : > { %790 = vmatmul.f32.gmra.mxu3 %v612_v5 }
 0x111   : > { %697 = vmatmul.f32.gmra.mxu1 %v581_v6  ;;  %p1806_p10 = pnand %p1805_p9, %p1801_p8 }
 0x112   : > { %v501_v7 = vpop.f32.mrf.mxu2 }
 0x113   : > { %v502_v8 = vadd.f32 %v2043_v0, %v501_v7 }
 0x114   : > { %v408_v9 = vpop.f32.mrf.mxu0 }
 0x115   : > { %v613_v12 = vmax.f32 %v502_v8, 0.0  ;;  %v409_v13 = vadd.f32 %v2043_v0, %v408_v9 }
 0x117   : > { %v582_v14 = vmax.f32 %v409_v13, 0.0  ;;  %455 = vmatmul.f32.gmra.mxu0 %v305_v10  ;;  %551 = vmatmul.f32.gmra.mxu2 %v337_v11 }
 0x118   : > { %793 = vmatmul.f32.gmra.mxu3 %v613_v12 }
 0x119   : > { %700 = vmatmul.f32.gmra.mxu1 %v582_v14 }
 0x11a   : > { %v504_v15 = vpop.f32.mrf.mxu2 }
 0x11b   : > { %v505_v16 = vadd.f32 %v2043_v0, %v504_v15 }
 0x11c   : > { %v411_v17 = vpop.f32.mrf.mxu0 }
 0x11d   : > { %v614_v20 = vmax.f32 %v505_v16, 0.0  ;;  %v412_v21 = vadd.f32 %v2043_v0, %v411_v17 }
 0x11f   : > { %v583_v22 = vmax.f32 %v412_v21, 0.0  ;;  %458 = vmatmul.f32.gmra.mxu0 %v306_v18  ;;  %554 = vmatmul.f32.gmra.mxu2 %v338_v19 }
 0x120   : > { %796 = vmatmul.f32.gmra.mxu3 %v614_v20 }
 0x121   : > { %703 = vmatmul.f32.gmra.mxu1 %v583_v22  ;;  %v2117_v22 = vld [vmem:[%s2341_s4] ss:$0 sm:$0xff] }
 0x122   : > { %v507_v23 = vpop.f32.mrf.mxu2 }
 0x123   : > { %v508_v24 = vadd.f32 %v2043_v0, %v507_v23 }
 0x124   : > { %v414_v25 = vpop.f32.mrf.mxu0 }
 0x125   : > { %v615_v28 = vmax.f32 %v508_v24, 0.0  ;;  %v415_v29 = vadd.f32 %v2043_v0, %v414_v25 }
 0x127   : > { %v584_v30 = vmax.f32 %v415_v29, 0.0  ;;  %461 = vmatmul.f32.gmra.mxu0 %v307_v26  ;;  %557 = vmatmul.f32.gmra.mxu2 %v339_v27 }
 0x128   : > { %799 = vmatmul.f32.gmra.mxu3 %v615_v28 }
 0x129   : > { %706 = vmatmul.f32.gmra.mxu1 %v584_v30 }
 0x12a   : > { %v510_v31 = vpop.f32.mrf.mxu2 }
 0x12b   : > { %v511_v32 = vadd.f32 %v2043_v0, %v510_v31 }
 0x12c   : > { %v417_v33 = vpop.f32.mrf.mxu0 }
 0x12d   : > { %v616_v36 = vmax.f32 %v511_v32, 0.0  ;;  %v418_v37 = vadd.f32 %v2043_v0, %v417_v33 }
 0x12f   : > { %v585_v38 = vmax.f32 %v418_v37, 0.0  ;;  %464 = vmatmul.f32.gmra.mxu0 %v308_v34  ;;  %560 = vmatmul.f32.gmra.mxu2 %v340_v35 }
 0x130   : > { %802 = vmatmul.f32.gmra.mxu3 %v616_v36 }
 0x131   : > { %709 = vmatmul.f32.gmra.mxu1 %v585_v38 }
 0x132   : > { %v513_v39 = vpop.f32.mrf.mxu2 }
 0x133   : > { %v514_v40 = vadd.f32 %v2043_v0, %v513_v39 }
 0x134   : > { %v420_v41 = vpop.f32.mrf.mxu0 }
 0x135   : > { %v617_v44 = vmax.f32 %v514_v40, 0.0  ;;  %v421_v45 = vadd.f32 %v2043_v0, %v420_v41 }
 0x137   : > { %v586_v46 = vmax.f32 %v421_v45, 0.0  ;;  %467 = vmatmul.f32.gmra.mxu0 %v309_v42  ;;  %563 = vmatmul.f32.gmra.mxu2 %v341_v43 }
 0x138   : > { %805 = vmatmul.f32.gmra.mxu3 %v617_v44 }
 0x139   : > { %712 = vmatmul.f32.gmra.mxu1 %v586_v46 }
 0x13a   : > { %v516_v47 = vpop.f32.mrf.mxu2 }
 0x13b   : > { %v517_v48 = vadd.f32 %v2043_v0, %v516_v47 }
 0x13c   : > { %v423_v49 = vpop.f32.mrf.mxu0 }
 0x13d   : > { %v618_v52 = vmax.f32 %v517_v48, 0.0  ;;  %v424_v53 = vadd.f32 %v2043_v0, %v423_v49 }
 0x13f   : > { %v587_v54 = vmax.f32 %v424_v53, 0.0  ;;  %470 = vmatmul.f32.gmra.mxu0 %v310_v50  ;;  %566 = vmatmul.f32.gmra.mxu2 %v342_v51 }
 0x140   : > { %808 = vmatmul.f32.gmra.mxu3 %v618_v52 }
 0x141   : > { %715 = vmatmul.f32.gmra.mxu1 %v587_v54 }
 0x142   : > { %v519_v55 = vpop.f32.mrf.mxu2 }
 0x143   : > { %v520_v56 = vadd.f32 %v2043_v0, %v519_v55 }
 0x144   : > { %v426_v57 = vpop.f32.mrf.mxu0 }
 0x145   : > { %v619_v60 = vmax.f32 %v520_v56, 0.0  ;;  %v427_v61 = vadd.f32 %v2043_v0, %v426_v57 }
 0x147   : > { %v588_v62 = vmax.f32 %v427_v61, 0.0  ;;  %473 = vmatmul.f32.gmra.mxu0 %v311_v58  ;;  %569 = vmatmul.f32.gmra.mxu2 %v343_v59 }
 0x148   : > { %811 = vmatmul.f32.gmra.mxu3 %v619_v60 }
 0x149   : > { %718 = vmatmul.f32.gmra.mxu1 %v588_v62 }
 0x14a   : > { %v522_v63 = vpop.f32.mrf.mxu2 }
 0x14b   : > { %v523_v1 = vadd.f32 %v2043_v0, %v522_v63 }
 0x14c   : > { %v429_v2 = vpop.f32.mrf.mxu0 }
 0x14d   : > { %v620_v3 = vmax.f32 %v523_v1, 0.0  ;;  %v430_v4 = vadd.f32 %v2043_v0, %v429_v2 }
 0x14e   : > { %v674_v5 = vpop.f32.mrf.mxu1 }
 0x14f   : > { %v589_v6 = vmax.f32 %v430_v4, 0.0  ;;  %v675_v27 = vadd.f32 %v2117_v22, %v674_v5 }
 0x150   : > { %814 = vmatmul.f32.gmra.mxu3 %v620_v3 }
 0x151   : > { %721 = vmatmul.f32.gmra.mxu1 %v589_v6  ;;  %v866_v33 = vmax.f32 %v675_v27, 0.0 }
 0x152   : > { %v525_v7 = vpop.f32.mrf.mxu2 }
 0x153   : > { %v526_v8 = vadd.f32 %v2043_v0, %v525_v7  ;;  %v930_v39 = vrot.slane %v866_v33, 4 }
 0x154   : > { %v432_v9 = vpop.f32.mrf.mxu0 }
 0x155   : > { %v621_v10 = vmax.f32 %v526_v8, 0.0  ;;  %v433_v11 = vadd.f32 %v2043_v0, %v432_v9  ;;  %v931_v46 = vmax.f32 %v866_v33, %v930_v39 }
 0x156   : > { %v677_v12 = vpop.f32.mrf.mxu1 }
 0x157   : > { %v590_v13 = vmax.f32 %v433_v11, 0.0  ;;  %v678_v31 = vadd.f32 %v2117_v22, %v677_v12  ;;  %v932_v56 = vrot.slane %v931_v46, 2 }
 0x158   : > { %817 = vmatmul.f32.gmra.mxu3 %v621_v10 }
 0x159   : > { %724 = vmatmul.f32.gmra.mxu1 %v590_v13  ;;  %v867_v35 = vmax.f32 %v678_v31, 0.0  ;;  %v933_v4 = vmax.f32 %v931_v46, %v932_v56 }
 0x15a   : > { %v528_v14 = vpop.f32.mrf.mxu2 }
 0x15b   : > { %v529_v15 = vadd.f32 %v2043_v0, %v528_v14  ;;  %v770_v16 = vpop.f32.mrf.mxu3  ;;  %v936_v44 = vrot.slane %v867_v35, 4 }
 0x15c   : > { %v435_v17 = vpop.f32.mrf.mxu0  ;;  %v771_v47 = vadd.f32 %v2117_v22, %v770_v16 }
 0x15d   : > { %v622_v18 = vmax.f32 %v529_v15, 0.0  ;;  %v436_v19 = vadd.f32 %v2043_v0, %v435_v17  ;;  %v937_v51 = vmax.f32 %v867_v35, %v936_v44  ;;  %v934_v17 = vrot.slane %v933_v4, 1 }
 0x15e   : > { %v680_v20 = vpop.f32.mrf.mxu1  ;;  %v898_v59 = vmax.f32 %v771_v47, 0.0 }
 0x15f   : > { %v591_v21 = vmax.f32 %v436_v19, 0.0  ;;  %v681_v42 = vadd.f32 %v2117_v22, %v680_v20  ;;  %v938_v63 = vrot.slane %v937_v51, 2 }
 0x160   : > { %820 = vmatmul.f32.gmra.mxu3 %v622_v18  ;;  %v1122_v6 = vrot.slane %v898_v59, 4 }
 0x161   : > { %727 = vmatmul.f32.gmra.mxu1 %v591_v21  ;;  %v868_v48 = vmax.f32 %v681_v42, 0.0  ;;  %v939_v11 = vmax.f32 %v937_v51, %v938_v63 }
 0x162   : > { %v531_v23 = vpop.f32.mrf.mxu2  ;;  %v1123_v21 = vmax.f32 %v898_v59, %v1122_v6 }
 0x163   : > { %v532_v24 = vadd.f32 %v2043_v0, %v531_v23  ;;  %v773_v25 = vpop.f32.mrf.mxu3  ;;  %v942_v60 = vrot.slane %v868_v48, 4  ;;  %v940_v27 = vrot.slane %v939_v11, 1 }
 0x164   : > { %v438_v26 = vpop.f32.mrf.mxu0  ;;  %v774_v8 = vadd.f32 %v2117_v22, %v773_v25 }
 0x165   : > { %v623_v28 = vmax.f32 %v532_v24, 0.0  ;;  %v439_v29 = vadd.f32 %v2043_v0, %v438_v26  ;;  %v943_v7 = vmax.f32 %v868_v48, %v942_v60  ;;  %v941_v42 = vmax.f32 %v939_v11, %v940_v27 }
 0x166   : > { %v683_v30 = vpop.f32.mrf.mxu1  ;;  %v899_v24 = vmax.f32 %v774_v8, 0.0 }
 0x167   : > { %v592_v32 = vmax.f32 %v439_v29, 0.0  ;;  %v684_v49 = vadd.f32 %v2117_v22, %v683_v30  ;;  %v944_v23 = vrot.slane %v943_v7, 2 }
 0x168   : > { %823 = vmatmul.f32.gmra.mxu3 %v623_v28  ;;  %v1128_v39 = vrot.slane %v899_v24, 4 }
 0x169   : > { %730 = vmatmul.f32.gmra.mxu1 %v592_v32  ;;  %v869_v61 = vmax.f32 %v684_v49, 0.0 }
 0x16a   : > { %v534_v34 = vpop.f32.mrf.mxu2 }
 0x16b   : > { %v535_v36 = vadd.f32 %v2043_v0, %v534_v34  ;;  %v776_v37 = vpop.f32.mrf.mxu3  ;;  %v948_v9 = vrot.slane %v869_v61, 4  ;;  %v935_v34 = vmax.f32 %v933_v4, %v934_v17 }
 0x16c   : > { %v441_v38 = vpop.f32.mrf.mxu0  ;;  %v777_v14 = vadd.f32 %v2117_v22, %v776_v37  ;;  %v1124_v37 = vrot.slane %v1123_v21, 2 }
 0x16d   : > { %v624_v40 = vmax.f32 %v535_v36, 0.0  ;;  %v442_v41 = vadd.f32 %v2043_v0, %v441_v38  ;;  %v949_v26 = vmax.f32 %v869_v61, %v948_v9  ;;  %v945_v38 = vmax.f32 %v943_v7, %v944_v23 }
 0x16e   : > { %v686_v43 = vpop.f32.mrf.mxu1  ;;  %v900_v31 = vmax.f32 %v777_v14, 0.0  ;;  %v2144_v6 = vmax.f32 %v1123_v21, %v1124_v37 }
 0x16f   : > { %v593_v45 = vmax.f32 %v442_v41, 0.0  ;;  %v687_v54 = vadd.f32 %v2117_v22, %v686_v43  ;;  %v946_v56 = vrot.slane %v945_v38, 1 }
 0x170   : > { %826 = vmatmul.f32.gmra.mxu3 %v624_v40  ;;  %v950_v40 = vrot.slane %v949_v26, 2  ;;  %v1134_v47 = vrot.slane %v900_v31, 4 }
 0x171   : > { %733 = vmatmul.f32.gmra.mxu1 %v593_v45  ;;  %v870_v3 = vmax.f32 %v687_v54, 0.0  ;;  %v947_v9 = vmax.f32 %v945_v38, %v946_v56 }
 0x172   : > { %v537_v50 = vpop.f32.mrf.mxu2 }
 0x173   : > { %v538_v52 = vadd.f32 %v2043_v0, %v537_v50  ;;  %v779_v53 = vpop.f32.mrf.mxu3  ;;  %v954_v15 = vrot.slane %v870_v3, 4 }
 0x174   : > { %v444_v55 = vpop.f32.mrf.mxu0  ;;  %v780_v28 = vadd.f32 %v2117_v22, %v779_v53 }
 0x175   : > { %v625_v57 = vmax.f32 %v538_v52, 0.0  ;;  %v445_v58 = vadd.f32 %v2043_v0, %v444_v55  ;;  %v955_v32 = vmax.f32 %v870_v3, %v954_v15 }
 0x176   : > { %v689_v62 = vpop.f32.mrf.mxu1  ;;  %v901_v43 = vmax.f32 %v780_v28, 0.0 }
 0x177   : > { %v594_v1 = vmax.f32 %v445_v58, 0.0  ;;  %v690_v2 = vadd.f32 %v2117_v22, %v689_v62  ;;  %v956_v48 = vrot.slane %v955_v32, 2  ;;  %v951_v58 = vmax.f32 %v949_v26, %v950_v40 }
 0x178   : > { %829 = vmatmul.f32.gmra.mxu3 %v625_v57  ;;  %v1129_v57 = vmax.f32 %v899_v24, %v1128_v39  ;;  %v1140_v61 = vrot.slane %v901_v43, 4 }
 0x179   : > { %v871_v5 = vmax.f32 %v690_v2, 0.0  ;;  %736 = vmatmul.f32.gmra.mxu1 %v594_v1  ;;  %v1135_v2 = vmax.f32 %v900_v31, %v1134_v47  ;;  %v957_v3 = vmax.f32 %v955_v32, %v956_v48  ;;  %v952_v14 = vrot.slane %v951_v58, 1 }
 0x17a   : > { %v540_v10 = vpop.f32.mrf.mxu2  ;;  %v1141_v15 = vmax.f32 %v901_v43, %v1140_v61 }
 0x17b   : > { %v541_v12 = vadd.f32 %v2043_v0, %v540_v10  ;;  %v782_v13 = vpop.f32.mrf.mxu3  ;;  %v960_v18 = vrot.slane %v871_v5, 4  ;;  %v1130_v10 = vrot.slane %v1129_v57, 2 }
 0x17c   : > { %v447_v16 = vpop.f32.mrf.mxu0  ;;  %v783_v33 = vadd.f32 %v2117_v22, %v782_v13 }
 0x17d   : > { %v626_v19 = vmax.f32 %v541_v12, 0.0  ;;  %v448_v20 = vadd.f32 %v2043_v0, %v447_v16  ;;  %v961_v35 = vmax.f32 %v871_v5, %v960_v18  ;;  %v1379_v5 = vsel %vm1378_vm0, %v941_v42, %v935_v34 }
 0x17e   : > { %v692_v25 = vpop.f32.mrf.mxu1  ;;  %v902_v49 = vmax.f32 %v783_v33, 0.0  ;;  %v953_v34 = vmax.f32 %v951_v58, %v952_v14 }
 0x17f   : > { %v595_v29 = vmax.f32 %v448_v20, 0.0  ;;  %v693_v30 = vadd.f32 %v2117_v22, %v692_v25  ;;  %v962_v52 = vrot.slane %v961_v35, 2  ;;  %v958_v20 = vrot.slane %v957_v3, 1 }
 0x180   : > { %832 = vmatmul.f32.gmra.mxu3 %v626_v19  ;;  %v1146_v4 = vrot.slane %v902_v49, 4  ;;  %v1136_v19 = vrot.slane %v1135_v2, 2 }
 0x181   : > { %v872_v36 = vmax.f32 %v693_v30, 0.0  ;;  %739 = vmatmul.f32.gmra.mxu1 %v595_v29  ;;  %v963_v7 = vmax.f32 %v961_v35, %v962_v52  ;;  %v1131_v29 = vmax.f32 %v1129_v57, %v1130_v10  ;;  %v1142_v35 = vrot.slane %v1141_v15, 2 }
 0x182   : > { %v543_v41 = vpop.f32.mrf.mxu2  ;;  %v1147_v21 = vmax.f32 %v902_v49, %v1146_v4  ;;  %v959_v38 = vmax.f32 %v957_v3, %v958_v20  ;;  %v1137_v42 = vmax.f32 %v1135_v2, %v1136_v19  ;;  %v1126_v10 = vrot.slane %v2144_v6, 1 }
 0x183   : > { %v966_v44 = vrot.slane %v872_v36, 4  ;;  %v544_v45 = vadd.f32 %v2043_v0, %v543_v41  ;;  %v785_v46 = vpop.f32.mrf.mxu3  ;;  %v964_v26 = vrot.slane %v963_v7, 1  ;;  %v1381_v41 = vsel %vm1380_vm1, %v947_v9, %v1379_v5 }
 0x184   : > { %v786_v50 = vadd.f32 %v2117_v22, %v785_v46  ;;  %v450_v51 = vpop.f32.mrf.mxu0  ;;  %v1148_v39 = vrot.slane %v1147_v21, 2  ;;  %v1383_v49 = vsel %vm1382_vm2, %v953_v34, %v1381_v41  ;;  %v1138_v5 = vrot.slane %v1137_v42, 1 }
 0x185   : > { %v967_v53 = vmax.f32 %v872_v36, %v966_v44  ;;  %v627_v54 = vmax.f32 %v544_v45, 0.0  ;;  %v451_v55 = vadd.f32 %v2043_v0, %v450_v51  ;;  %v965_v43 = vmax.f32 %v963_v7, %v964_v26 }
 0x186   : > { %v903_v59 = vmax.f32 %v786_v50, 0.0  ;;  %v695_v60 = vpop.f32.mrf.mxu1  ;;  %v1143_v50 = vmax.f32 %v1141_v15, %v1142_v35 }
 0x187   : > { %v968_v62 = vrot.slane %v967_v53, 2  ;;  %v596_v63 = vmax.f32 %v451_v55, 0.0  ;;  %v696_v1 = vadd.f32 %v2117_v22, %v695_v60  ;;  %v1149_v55 = vmax.f32 %v1147_v21, %v1148_v39 }
 0x188   : > { %835 = vmatmul.f32.gmra.mxu3 %v627_v54  ;;  %v1152_v12 = vrot.slane %v903_v59, 4  ;;  %v1385_v54 = vsel %vm1384_vm3, %v959_v38, %v1383_v49 }
 0x189   : > { %v873_v8 = vmax.f32 %v696_v1, 0.0  ;;  %742 = vmatmul.f32.gmra.mxu1 %v596_v63  ;;  %v969_v11 = vmax.f32 %v967_v53, %v968_v62  ;;  %v1132_v63 = vrot.slane %v1131_v29, 1 }
 0x18a   : > { %v546_v13 = vpop.f32.mrf.mxu2  ;;  %v1153_v31 = vmax.f32 %v903_v59, %v1152_v12  ;;  %v1387_v59 = vsel %vm1386_vm4, %v965_v43, %v1385_v54 }
 0x18b   : > { %v972_v16 = vrot.slane %v873_v8, 4  ;;  %v547_v17 = vadd.f32 %v2043_v0, %v546_v13  ;;  %v788_v18 = vpop.f32.mrf.mxu3  ;;  %v970_v30 = vrot.slane %v969_v11, 1  ;;  %v1150_v13 = vrot.slane %v1149_v55, 1 }
 0x18c   : > { %v789_v23 = vadd.f32 %v2117_v22, %v788_v18  ;;  %v453_v24 = vpop.f32.mrf.mxu0  ;;  %v1154_v46 = vrot.slane %v1153_v31, 2  ;;  %v1133_v14 = vmax.f32 %v1131_v29, %v1132_v63  ;;  %v1139_v18 = vmax.f32 %v1137_v42, %v1138_v5 }
 0x18d   : > { %v973_v25 = vmax.f32 %v873_v8, %v972_v16  ;;  %v628_v27 = vmax.f32 %v547_v17, 0.0  ;;  %v454_v28 = vadd.f32 %v2043_v0, %v453_v24  ;;  %v971_v45 = vmax.f32 %v969_v11, %v970_v30 }
 0x18e   : > { %v904_v32 = vmax.f32 %v789_v23, 0.0  ;;  %v2149_v33 = vpop.f32.mrf.mxu1  ;;  %v1155_v2 = vmax.f32 %v1153_v31, %v1154_v46  ;;  %v1144_v11 = vrot.slane %v1143_v50, 1  ;;  %v1127_v23 = vmax.f32 %v2144_v6, %v1126_v10 }
 0x18f   : > { %v974_v36 = vrot.slane %v973_v25, 2  ;;  %v597_v37 = vmax.f32 %v454_v28, 0.0  ;;  %v1389_v1 = vsel %vm1388_vm5, %v971_v45, %v1387_v59 }
 0x190   : > { %v1158_v40 = vrot.slane %v904_v32, 4  ;;  %838 = vmatmul.f32.gmra.mxu3 %v628_v27  ;;  %v1156_v15 = vrot.slane %v1155_v2, 1  ;;  %v1145_v24 = vmax.f32 %v1143_v50, %v1144_v11  ;;  %v1151_v27 = vmax.f32 %v1149_v55, %v1150_v13 }
 0x191   : > { %v975_v44 = vmax.f32 %v973_v25, %v974_v36  ;;  %745 = vmatmul.f32.gmra.mxu1 %v597_v37  ;;  %v1413_v29 = vsel %vm1378_vm0, %v1133_v14, %v1127_v23 }
 0x192   : > { %v1159_v47 = vmax.f32 %v904_v32, %v1158_v40  ;;  %v549_v48 = vpop.f32.mrf.mxu2  ;;  %v1157_v31 = vmax.f32 %v1155_v2, %v1156_v15  ;;  %v1414_v35 = vsel %vm1380_vm1, %v1139_v18, %v1413_v29 }
 0x193   : > { %v976_v51 = vrot.slane %v975_v44, 1  ;;  %v550_v52 = vadd.f32 %v2043_v0, %v549_v48  ;;  %v791_v53 = vpop.f32.mrf.mxu3  ;;  %v1415_v38 = vsel %vm1382_vm2, %v1145_v24, %v1414_v35 }
 0x194   : > { %v1160_v56 = vrot.slane %v1159_v47, 2  ;;  %v792_v57 = vadd.f32 %v2117_v22, %v791_v53  ;;  %v456_v58 = vpop.f32.mrf.mxu0  ;;  %v1416_v39 = vsel %vm1384_vm3, %v1151_v27, %v1415_v38 }
 0x195   : > { %v977_v60 = vmax.f32 %v975_v44, %v976_v51  ;;  %v629_v61 = vmax.f32 %v550_v52, 0.0  ;;  %v457_v62 = vadd.f32 %v2043_v0, %v456_v58  ;;  %v1417_v40 = vsel %vm1386_vm4, %v1157_v31, %v1416_v39 }
 0x196   : > { %v905_v3 = vmax.f32 %v792_v57, 0.0  ;;  %v2160_v4 = vpop.f32.mrf.mxu1  ;;  %v1161_v8 = vmax.f32 %v1159_v47, %v1160_v56  ;;  %v699_v52 = vadd.f32 %v2117_v22, %v2149_v33 }
 0x197   : > { %v1391_v7 = vsel %vm1390_vm6, %v977_v60, %v1389_v1  ;;  %v598_v9 = vmax.f32 %v457_v62, 0.0  ;;  %v702_v60 = vadd.f32 %v2117_v22, %v2160_v4 }
 0x198   : > { %1449 = vst [vmem:[%s2164_s13] sm:$0xff] %v1391_v7  ;;  %v1164_v12 = vrot.slane %v905_v3, 4  ;;  %841 = vmatmul.f32.gmra.mxu3 %v629_v61  ;;  %v1162_v19 = vrot.slane %v1161_v8, 1  ;;  %v874_v57 = vmax.f32 %v699_v52, 0.0 }
 0x199   : > { %748 = vmatmul.f32.gmra.mxu1 %v598_v9  ;;  %v875_v1 = vmax.f32 %v702_v60, 0.0 }
 0x19a   : > { %v1165_v16 = vmax.f32 %v905_v3, %v1164_v12  ;;  %v552_v17 = vpop.f32.mrf.mxu2  ;;  %v1163_v36 = vmax.f32 %v1161_v8, %v1162_v19  ;;  %v978_v63 = vrot.slane %v874_v57, 4 }
 0x19b   : > { %v553_v20 = vadd.f32 %v2043_v0, %v552_v17  ;;  %v2168_v21 = vpop.f32.mrf.mxu3  ;;  %v984_v12 = vrot.slane %v875_v1, 4 }
 0x19c   : > { %v1166_v26 = vrot.slane %v1165_v16, 2  ;;  %v459_v25 = vpop.f32.mrf.mxu0  ;;  %v1418_v43 = vsel %vm1388_vm5, %v1163_v36, %v1417_v40  ;;  %v979_v10 = vmax.f32 %v874_v57, %v978_v63  ;;  %v2196_v24 = vadd.f32 %v2117_v22, %v2168_v21 }
 0x19d   : > { %v630_v28 = vmax.f32 %v553_v20, 0.0  ;;  %v460_v30 = vadd.f32 %v2043_v0, %v459_v25  ;;  %v985_v23 = vmax.f32 %v875_v1, %v984_v12 }
 0x19e   : > { %v1167_v32 = vmax.f32 %v1165_v16, %v1166_v26  ;;  %v704_v34 = vpop.f32.mrf.mxu1  ;;  %v980_v19 = vrot.slane %v979_v10, 2 }
 0x19f   : > { %v599_v37 = vmax.f32 %v460_v30, 0.0  ;;  %v705_v33 = vadd.f32 %v2117_v22, %v704_v34  ;;  %v986_v38 = vrot.slane %v985_v23, 2 }
 0x1a0   : > { %v1168_v6 = vrot.slane %v1167_v32, 1  ;;  %844 = vmatmul.f32.gmra.mxu3 %v630_v28  ;;  %v981_v34 = vmax.f32 %v979_v10, %v980_v19 }
 0x1a1   : > { %751 = vmatmul.f32.gmra.mxu1 %v599_v37  ;;  %v876_v13 = vmax.f32 %v705_v33, 0.0 }
 0x1a2   : > { %v1169_v41 = vmax.f32 %v1167_v32, %v1168_v6  ;;  %v555_v42 = vpop.f32.mrf.mxu2  ;;  %v906_v6 = vmax.f32 %v2196_v24, 0.0 }
 0x1a3   : > { %v556_v44 = vadd.f32 %v2043_v0, %v555_v42  ;;  %v797_v45 = vpop.f32.mrf.mxu3  ;;  %v990_v26 = vrot.slane %v876_v13, 4 }
 0x1a4   : > { %v1419_v46 = vsel %vm1390_vm6, %v1169_v41, %v1418_v43  ;;  %v462_v47 = vpop.f32.mrf.mxu0  ;;  %v798_v27 = vadd.f32 %v2117_v22, %v797_v45 }
 0x1a5   : > { %1453 = vst [vmem:[%s2164_s13 + $0x20] sm:$0xff] %v1419_v46  ;;  %v631_v48 = vmax.f32 %v556_v44, 0.0  ;;  %v463_v49 = vadd.f32 %v2043_v0, %v462_v47  ;;  %v991_v21 = vmax.f32 %v876_v13, %v990_v26 }
 0x1a6   : > { %v707_v50 = vpop.f32.mrf.mxu1  ;;  %v907_v41 = vmax.f32 %v798_v27, 0.0 }
 0x1a7   : > { %v600_v51 = vmax.f32 %v463_v49, 0.0  ;;  %v708_v3 = vadd.f32 %v2117_v22, %v707_v50  ;;  %v987_v50 = vmax.f32 %v985_v23, %v986_v38  ;;  %v992_v52 = vrot.slane %v991_v21, 2 }
 0x1a8   : > { %847 = vmatmul.f32.gmra.mxu3 %v631_v48  ;;  %v982_v48 = vrot.slane %v981_v34, 1 }
 0x1a9   : > { %754 = vmatmul.f32.gmra.mxu1 %v600_v51  ;;  %v877_v15 = vmax.f32 %v708_v3, 0.0  ;;  %v1170_v51 = vrot.slane %v906_v6, 4 }
 0x1aa   : > { %v558_v53 = vpop.f32.mrf.mxu2 }
 0x1ab   : > { %v559_v54 = vadd.f32 %v2043_v0, %v558_v53  ;;  %v800_v55 = vpop.f32.mrf.mxu3  ;;  %v996_v28 = vrot.slane %v877_v15, 4 }
 0x1ac   : > { %v465_v56 = vpop.f32.mrf.mxu0  ;;  %v801_v39 = vadd.f32 %v2117_v22, %v800_v55  ;;  %v1176_v55 = vrot.slane %v907_v41, 4 }
 0x1ad   : > { %v632_v58 = vmax.f32 %v559_v54, 0.0  ;;  %v466_v59 = vadd.f32 %v2043_v0, %v465_v56  ;;  %v997_v42 = vmax.f32 %v877_v15, %v996_v28 }
 0x1ae   : > { %v710_v61 = vpop.f32.mrf.mxu1  ;;  %v908_v53 = vmax.f32 %v801_v39, 0.0 }
 0x1af   : > { %v601_v62 = vmax.f32 %v466_v59, 0.0  ;;  %v711_v8 = vadd.f32 %v2117_v22, %v710_v61  ;;  %v998_v56 = vrot.slane %v997_v42, 2 }
 0x1b0   : > { %850 = vmatmul.f32.gmra.mxu3 %v632_v58  ;;  %v1690_v58 = vld [vmem:[%s2339_s2] ss:$0 sm:$0xff]  ;;  %v1182_v10 = vrot.slane %v908_v53, 4 }
 0x1b1   : > { %757 = vmatmul.f32.gmra.mxu1 %v601_v62  ;;  %v878_v18 = vmax.f32 %v711_v8, 0.0  ;;  %v988_v8 = vrot.slane %v987_v50, 1  ;;  %v999_v12 = vmax.f32 %v997_v42, %v998_v56 }
 0x1b2   : > { %v561_v2 = vpop.f32.mrf.mxu2 }
 0x1b3   : > { %v562_v5 = vadd.f32 %v2043_v0, %v561_v2  ;;  %v803_v7 = vpop.f32.mrf.mxu3  ;;  %v1002_v31 = vrot.slane %v878_v18, 4 }
 0x1b4   : > { %v468_v9 = vpop.f32.mrf.mxu0  ;;  %v804_v46 = vadd.f32 %v2117_v22, %v803_v7 }
 0x1b5   : > { %v633_v11 = vmax.f32 %v562_v5, 0.0  ;;  %v469_v4 = vadd.f32 %v2043_v0, %v468_v9  ;;  %v1003_v45 = vmax.f32 %v878_v18, %v1002_v31  ;;  %v993_v9 = vmax.f32 %v991_v21, %v992_v52 }
 0x1b6   : > { %v713_v14 = vpop.f32.mrf.mxu1  ;;  %v909_v62 = vmax.f32 %v804_v46, 0.0  ;;  %v1000_v31 = vrot.slane %v999_v12, 1 }
 0x1b7   : > { %v602_v16 = vmax.f32 %v469_v4, 0.0  ;;  %v714_v17 = vadd.f32 %v2117_v22, %v713_v14  ;;  %v1004_v61 = vrot.slane %v1003_v45, 2  ;;  %v994_v27 = vrot.slane %v993_v9, 1 }
 0x1b8   : > { %853 = vmatmul.f32.gmra.mxu3 %v633_v11  ;;  %v1188_v19 = vrot.slane %v909_v62, 4 }
 0x1b9   : > { %v879_v20 = vmax.f32 %v714_v17, 0.0  ;;  %760 = vmatmul.f32.gmra.mxu1 %v602_v16  ;;  %v983_v16 = vmax.f32 %v981_v34, %v982_v48  ;;  %v1177_v17 = vmax.f32 %v907_v41, %v1176_v55  ;;  %v1005_v18 = vmax.f32 %v1003_v45, %v1004_v61 }
 0x1ba   : > { %v564_v25 = vpop.f32.mrf.mxu2  ;;  %v1189_v21 = vmax.f32 %v909_v62, %v1188_v19 }
 0x1bb   : > { %v565_v30 = vadd.f32 %v2043_v0, %v564_v25  ;;  %v806_v29 = vpop.f32.mrf.mxu3  ;;  %v1008_v35 = vrot.slane %v879_v20, 4  ;;  %v989_v25 = vmax.f32 %v987_v50, %v988_v8  ;;  %v1178_v34 = vrot.slane %v1177_v17, 2 }
 0x1bc   : > { %v471_v32 = vpop.f32.mrf.mxu0  ;;  %v807_v47 = vadd.f32 %v2117_v22, %v806_v29  ;;  %v1006_v38 = vrot.slane %v1005_v18, 1 }
 0x1bd   : > { %v634_v36 = vmax.f32 %v565_v30, 0.0  ;;  %v472_v37 = vadd.f32 %v2043_v0, %v471_v32  ;;  %v1009_v0 = vmax.f32 %v879_v20, %v1008_v35  ;;  %v1171_v20 = vmax.f32 %v906_v6, %v1170_v51 }
 0x1be   : > { %v716_v40 = vpop.f32.mrf.mxu1  ;;  %v910_v63 = vmax.f32 %v807_v47, 0.0  ;;  %v1183_v32 = vmax.f32 %v908_v53, %v1182_v10  ;;  %v1392_v51 = vsel %vm1378_vm0, %v989_v25, %v983_v16  ;;  %v1007_v52 = vmax.f32 %v1005_v18, %v1006_v38 }
 0x1bf   : > { %v603_v43 = vmax.f32 %v472_v37, 0.0  ;;  %v717_v44 = vadd.f32 %v2117_v22, %v716_v40  ;;  %v1010_v2 = vrot.slane %v1009_v0, 2  ;;  %v1172_v48 = vrot.slane %v1171_v20, 2 }
 0x1c0   : > { %856 = vmatmul.f32.gmra.mxu3 %v634_v36  ;;  %v1194_v24 = vrot.slane %v910_v63, 4  ;;  %v1190_v53 = vrot.slane %v1189_v21, 2  ;;  %v1179_v55 = vmax.f32 %v1177_v17, %v1178_v34 }
 0x1c1   : > { %v880_v49 = vmax.f32 %v717_v44, 0.0  ;;  %763 = vmatmul.f32.gmra.mxu1 %v603_v43  ;;  %v1011_v23 = vmax.f32 %v1009_v0, %v1010_v2  ;;  %v995_v43 = vmax.f32 %v993_v9, %v994_v27  ;;  %v1001_v0 = vmax.f32 %v999_v12, %v1000_v31 }
 0x1c2   : > { %v567_v54 = vpop.f32.mrf.mxu2  ;;  %v1195_v40 = vmax.f32 %v910_v63, %v1194_v24  ;;  %v1173_v63 = vmax.f32 %v1171_v20, %v1172_v48  ;;  %v1180_v12 = vrot.slane %v1179_v55, 1 }
 0x1c3   : > { %v1014_v57 = vrot.slane %v880_v49, 4  ;;  %v568_v59 = vadd.f32 %v1690_v58, %v567_v54  ;;  %v809_v60 = vpop.f32.mrf.mxu3  ;;  %v1012_v6 = vrot.slane %v1011_v23, 1 }
 0x1c4   : > { %v810_v1 = vadd.f32 %v2117_v22, %v809_v60  ;;  %v474_v33 = vpop.f32.mrf.mxu0  ;;  %v1174_v20 = vrot.slane %v1173_v63, 1  ;;  %v1181_v25 = vmax.f32 %v1179_v55, %v1180_v12 }
 0x1c5   : > { %v1015_v3 = vmax.f32 %v880_v49, %v1014_v57  ;;  %v635_v5 = vmax.f32 %v568_v59, 0.0  ;;  %v475_v7 = vadd.f32 %v1690_v58, %v474_v33  ;;  %v1184_v49 = vrot.slane %v1183_v32, 2 }
 0x1c6   : > { %v911_v11 = vmax.f32 %v810_v1, 0.0  ;;  %v719_v4 = vpop.f32.mrf.mxu1  ;;  %v1013_v56 = vmax.f32 %v1011_v23, %v1012_v6  ;;  %v1196_v57 = vrot.slane %v1195_v40, 2  ;;  %v1393_v59 = vsel %vm1380_vm1, %v995_v43, %v1392_v51 }
 0x1c7   : > { %v1016_v13 = vrot.slane %v1015_v3, 2  ;;  %v604_v14 = vmax.f32 %v475_v7, 0.0  ;;  %v720_v15 = vadd.f32 %v2117_v22, %v719_v4  ;;  %v1394_v1 = vsel %vm1382_vm2, %v1001_v0, %v1393_v59 }
 0x1c8   : > { %859 = vmatmul.f32.gmra.mxu3 %v635_v5  ;;  %v1200_v30 = vrot.slane %v911_v11, 4  ;;  %v1185_v33 = vmax.f32 %v1183_v32, %v1184_v49  ;;  %v1395_v5 = vsel %vm1384_vm3, %v1007_v52, %v1394_v1  ;;  %v1191_v7 = vmax.f32 %v1189_v21, %v1190_v53 }
 0x1c9   : > { %v881_v26 = vmax.f32 %v720_v15, 0.0  ;;  %766 = vmatmul.f32.gmra.mxu1 %v604_v14  ;;  %v1017_v28 = vmax.f32 %v1015_v3, %v1016_v13  ;;  %v1396_v10 = vsel %vm1386_vm4, %v1013_v56, %v1395_v5  ;;  %v1175_v32 = vmax.f32 %v1173_v63, %v1174_v20 }
 0x1ca   : > { %v570_v29 = vpop.f32.mrf.mxu2  ;;  %v1201_v45 = vmax.f32 %v911_v11, %v1200_v30  ;;  %v1197_v11 = vmax.f32 %v1195_v40, %v1196_v57  ;;  %v1186_v17 = vrot.slane %v1185_v33, 1  ;;  %v1192_v23 = vrot.slane %v1191_v7, 1 }
 0x1cb   : > { %v1020_v35 = vrot.slane %v881_v26, 4  ;;  %v571_v36 = vadd.f32 %v1690_v58, %v570_v29  ;;  %v812_v37 = vpop.f32.mrf.mxu3  ;;  %v1018_v44 = vrot.slane %v1017_v28, 1  ;;  %v1420_v34 = vsel %vm1378_vm0, %v1181_v25, %v1175_v32 }
 0x1cc   : > { %v813_v39 = vadd.f32 %v2117_v22, %v812_v37  ;;  %v1202_v61 = vrot.slane %v1201_v45, 2  ;;  %v1187_v30 = vmax.f32 %v1185_v33, %v1186_v17 }
 0x1cd   : > { %v1021_v41 = vmax.f32 %v881_v26, %v1020_v35  ;;  %v636_v42 = vmax.f32 %v571_v36, 0.0  ;;  %v1019_v60 = vmax.f32 %v1017_v28, %v1018_v44  ;;  %v1198_v26 = vrot.slane %v1197_v11, 1 }
 0x1ce   : > { %v912_v46 = vmax.f32 %v813_v39, 0.0  ;;  %v2212_v47 = vpop.f32.mrf.mxu1  ;;  %v1203_v14 = vmax.f32 %v1201_v45, %v1202_v61  ;;  %v1193_v35 = vmax.f32 %v1191_v7, %v1192_v23  ;;  %v1421_v6 = vsel %vm1380_vm1, %v1187_v30, %v1420_v34 }
 0x1cf   : > { %v1022_v50 = vrot.slane %v1021_v41, 2  ;;  %v1397_v13 = vsel %vm1388_vm5, %v1019_v60, %v1396_v10  ;;  %v1199_v37 = vmax.f32 %v1197_v11, %v1198_v26  ;;  %v723_v51 = vadd.f32 %v2117_v22, %v2212_v47 }
 0x1d0   : > { %v1206_v54 = vrot.slane %v912_v46, 4  ;;  %862 = vmatmul.f32.gmra.mxu3 %v636_v42  ;;  %v1204_v27 = vrot.slane %v1203_v14, 1 }
 0x1d1   : > { %v1023_v58 = vmax.f32 %v1021_v41, %v1022_v50  ;;  %v1422_v41 = vsel %vm1382_vm2, %v1193_v35, %v1421_v6 }
 0x1d2   : > { %v1207_v62 = vmax.f32 %v912_v46, %v1206_v54  ;;  %v1205_v38 = vmax.f32 %v1203_v14, %v1204_v27  ;;  %v1423_v43 = vsel %vm1384_vm3, %v1199_v37, %v1422_v41  ;;  %v882_v54 = vmax.f32 %v723_v51, 0.0 }
 0x1d3   : > { %v1024_v2 = vrot.slane %v1023_v58, 1  ;;  %v815_v3 = vpop.f32.mrf.mxu3 }
 0x1d4   : > { %v1208_v8 = vrot.slane %v1207_v62, 2  ;;  %v816_v9 = vadd.f32 %v2117_v22, %v815_v3  ;;  %v1424_v44 = vsel %vm1386_vm4, %v1205_v38, %v1423_v43  ;;  %v1026_v60 = vrot.slane %v882_v54, 4 }
 0x1d5   : > { %v1025_v4 = vmax.f32 %v1023_v58, %v1024_v2 }
 0x1d6   : > { %v913_v15 = vmax.f32 %v816_v9, 0.0  ;;  %v725_v16 = vpop.f32.mrf.mxu1  ;;  %v1209_v19 = vmax.f32 %v1207_v62, %v1208_v8  ;;  %v1027_v3 = vmax.f32 %v882_v54, %v1026_v60 }
 0x1d7   : > { %v1398_v18 = vsel %vm1390_vm6, %v1025_v4, %v1397_v13  ;;  %v726_v53 = vadd.f32 %v2117_v22, %v725_v16 }
 0x1d8   : > { %1450 = vst [vmem:[%s2164_s13 + $0x8] sm:$0xff] %v1398_v18  ;;  %v1212_v24 = vrot.slane %v913_v15, 4  ;;  %v1210_v29 = vrot.slane %v1209_v19, 1  ;;  %v1028_v12 = vrot.slane %v1027_v3, 2 }
 0x1d9   : > { %v883_v58 = vmax.f32 %v726_v53, 0.0 }
 0x1da   : > { %v1213_v28 = vmax.f32 %v913_v15, %v1212_v24  ;;  %v1211_v40 = vmax.f32 %v1209_v19, %v1210_v29 }
 0x1db   : > { %v818_v31 = vpop.f32.mrf.mxu3  ;;  %v1032_v33 = vrot.slane %v883_v58, 4 }
 0x1dc   : > { %v1214_v36 = vrot.slane %v1213_v28, 2  ;;  %v1425_v46 = vsel %vm1388_vm5, %v1211_v40, %v1424_v44  ;;  %v819_v13 = vadd.f32 %v2117_v22, %v818_v31 }
 0x1dd   : > { %v1033_v9 = vmax.f32 %v883_v58, %v1032_v33 }
 0x1de   : > { %v1215_v21 = vmax.f32 %v1213_v28, %v1214_v36  ;;  %v728_v39 = vpop.f32.mrf.mxu1  ;;  %v1029_v28 = vmax.f32 %v1027_v3, %v1028_v12  ;;  %v914_v30 = vmax.f32 %v819_v13, 0.0 }
 0x1df   : > { %v729_v55 = vadd.f32 %v2117_v22, %v728_v39  ;;  %v1034_v19 = vrot.slane %v1033_v9, 2 }
 0x1e0   : > { %v1216_v42 = vrot.slane %v1215_v21, 1  ;;  %v1218_v43 = vrot.slane %v914_v30, 4 }
 0x1e1   : > { %v884_v61 = vmax.f32 %v729_v55, 0.0  ;;  %v1035_v37 = vmax.f32 %v1033_v9, %v1034_v19 }
 0x1e2   : > { %v1217_v45 = vmax.f32 %v1215_v21, %v1216_v42  ;;  %v1030_v42 = vrot.slane %v1029_v28, 1 }
 0x1e3   : > { %v821_v48 = vpop.f32.mrf.mxu3  ;;  %v1038_v5 = vrot.slane %v884_v61, 4  ;;  %v1036_v51 = vrot.slane %v1035_v37, 1 }
 0x1e4   : > { %v1426_v0 = vsel %vm1390_vm6, %v1217_v45, %v1425_v46  ;;  %v822_v11 = vadd.f32 %v2117_v22, %v821_v48  ;;  %v1031_v58 = vmax.f32 %v1029_v28, %v1030_v42 }
 0x1e5   : > { %1454 = vst [vmem:[%s2164_s13 + $0x28] sm:$0xff] %v1426_v0  ;;  %v1039_v14 = vmax.f32 %v884_v61, %v1038_v5 }
 0x1e6   : > { %v731_v49 = vpop.f32.mrf.mxu1  ;;  %v915_v24 = vmax.f32 %v822_v11, 0.0 }
 0x1e7   : > { %v732_v56 = vadd.f32 %v2117_v22, %v731_v49  ;;  %v1040_v29 = vrot.slane %v1039_v14, 2 }
 0x1e8   : > { %v1224_v39 = vrot.slane %v915_v24, 4 }
 0x1e9   : > { %v885_v63 = vmax.f32 %v732_v56, 0.0  ;;  %v1041_v44 = vmax.f32 %v1039_v14, %v1040_v29 }
 0x1ea   : > { %v1225_v54 = vmax.f32 %v915_v24, %v1224_v39 }
 0x1eb   : > { %v824_v50 = vpop.f32.mrf.mxu3  ;;  %v1044_v7 = vrot.slane %v885_v63, 4 }
 0x1ec   : > { %v825_v17 = vadd.f32 %v2117_v22, %v824_v50 }
 0x1ed   : > { %v1045_v16 = vmax.f32 %v885_v63, %v1044_v7 }
 0x1ee   : > { %v734_v52 = vpop.f32.mrf.mxu1  ;;  %v916_v32 = vmax.f32 %v825_v17, 0.0 }
 0x1ef   : > { %v735_v59 = vadd.f32 %v2117_v22, %v734_v52  ;;  %v1046_v31 = vrot.slane %v1045_v16, 2 }
 0x1f0   : > { %v1230_v0 = vrot.slane %v916_v32, 4 }
 0x1f1   : > { %v886_v47 = vmax.f32 %v735_v59, 0.0  ;;  %v1047_v48 = vmax.f32 %v1045_v16, %v1046_v31  ;;  %v1042_v59 = vrot.slane %v1041_v44, 1 }
 0x1f3   : > { %v827_v57 = vpop.f32.mrf.mxu3  ;;  %v1050_v10 = vrot.slane %v886_v47, 4  ;;  %v1048_v63 = vrot.slane %v1047_v48, 1 }
 0x1f4   : > { %v828_v23 = vadd.f32 %v2117_v22, %v827_v57 }
 0x1f5   : > { %v1051_v20 = vmax.f32 %v886_v47, %v1050_v10  ;;  %v1049_v17 = vmax.f32 %v1047_v48, %v1048_v63 }
 0x1f6   : > { %v737_v62 = vpop.f32.mrf.mxu1  ;;  %v917_v38 = vmax.f32 %v828_v23, 0.0 }
 0x1f7   : > { %v738_v1 = vadd.f32 %v2117_v22, %v737_v62  ;;  %v1052_v34 = vrot.slane %v1051_v20, 2  ;;  %v1219_v62 = vmax.f32 %v914_v30, %v1218_v43 }
 0x1f8   : > { %v1236_v53 = vrot.slane %v917_v38, 4 }
 0x1f9   : > { %v887_v2 = vmax.f32 %v738_v1, 0.0  ;;  %v1053_v52 = vmax.f32 %v1051_v20, %v1052_v34  ;;  %v1231_v1 = vmax.f32 %v916_v32, %v1230_v0  ;;  %v1220_v16 = vrot.slane %v1219_v62, 2 }
 0x1fa   : > { %v1237_v5 = vmax.f32 %v917_v38, %v1236_v53 }
 0x1fb   : > { %v830_v8 = vpop.f32.mrf.mxu3  ;;  %v1056_v4 = vrot.slane %v887_v2, 4  ;;  %v1054_v3 = vrot.slane %v1053_v52, 1 }
 0x1fc   : > { %v831_v25 = vadd.f32 %v2117_v22, %v830_v8  ;;  %v1226_v8 = vrot.slane %v1225_v54, 2  ;;  %v1238_v24 = vrot.slane %v1237_v5, 2 }
 0x1fd   : > { %v1057_v26 = vmax.f32 %v887_v2, %v1056_v4  ;;  %v1037_v2 = vmax.f32 %v1035_v37, %v1036_v51  ;;  %v1043_v4 = vmax.f32 %v1041_v44, %v1042_v59  ;;  %v1055_v23 = vmax.f32 %v1053_v52, %v1054_v3 }
 0x1fe   : > { %v740_v15 = vpop.f32.mrf.mxu1  ;;  %v918_v40 = vmax.f32 %v831_v25, 0.0  ;;  %v1227_v25 = vmax.f32 %v1225_v54, %v1226_v8 }
 0x1ff   : > { %v741_v18 = vadd.f32 %v2117_v22, %v740_v15  ;;  %v1058_v6 = vrot.slane %v1057_v26, 2  ;;  %v1399_v20 = vsel %vm1378_vm0, %v1037_v2, %v1031_v58 }
 0x200   : > { %v1242_v56 = vrot.slane %v918_v40, 4  ;;  %v1400_v29 = vsel %vm1380_vm1, %v1043_v4, %v1399_v20 }
 0x201   : > { %v888_v27 = vmax.f32 %v741_v18, 0.0  ;;  %v1059_v55 = vmax.f32 %v1057_v26, %v1058_v6  ;;  %v1232_v18 = vrot.slane %v1231_v1, 2  ;;  %v1401_v37 = vsel %vm1382_vm2, %v1049_v17, %v1400_v29 }
 0x202   : > { %v1243_v10 = vmax.f32 %v918_v40, %v1242_v56  ;;  %v1402_v39 = vsel %vm1384_vm3, %v1055_v23, %v1401_v37  ;;  %v1239_v6 = vmax.f32 %v1237_v5, %v1238_v24 }
 0x203   : > { %v1062_v35 = vrot.slane %v888_v27, 4  ;;  %v833_v36 = vpop.f32.mrf.mxu3  ;;  %v1060_v9 = vrot.slane %v1059_v55, 1  ;;  %v1233_v34 = vmax.f32 %v1231_v1, %v1232_v18 }
 0x204   : > { %v834_v21 = vadd.f32 %v2117_v22, %v833_v36  ;;  %v1244_v28 = vrot.slane %v1243_v10, 2  ;;  %v1221_v36 = vmax.f32 %v1219_v62, %v1220_v16  ;;  %v1240_v54 = vrot.slane %v1239_v6, 1 }
 0x205   : > { %v1063_v41 = vmax.f32 %v888_v27, %v1062_v35  ;;  %v1061_v27 = vmax.f32 %v1059_v55, %v1060_v9 }
 0x206   : > { %v919_v45 = vmax.f32 %v834_v21, 0.0  ;;  %v743_v46 = vpop.f32.mrf.mxu1  ;;  %v1245_v43 = vmax.f32 %v1243_v10, %v1244_v28  ;;  %v1222_v53 = vrot.slane %v1221_v36, 1  ;;  %v1241_v1 = vmax.f32 %v1239_v6, %v1240_v54 }
 0x207   : > { %v1064_v49 = vrot.slane %v1063_v41, 2  ;;  %v744_v50 = vadd.f32 %v2117_v22, %v743_v46  ;;  %v2249_v22 = vld [vmem:[%s2341_s4] ss:$0 sm:$0xff]  ;;  %v1403_v42 = vsel %vm1386_vm4, %v1061_v27, %v1402_v39 }
 0x208   : > { %v1248_v61 = vrot.slane %v919_v45, 4  ;;  %v1246_v56 = vrot.slane %v1245_v43, 1  ;;  %v1223_v63 = vmax.f32 %v1221_v36, %v1222_v53 }
 0x209   : > { %v889_v57 = vmax.f32 %v744_v50, 0.0  ;;  %v1065_v60 = vmax.f32 %v1063_v41, %v1064_v49  ;;  %v1234_v50 = vrot.slane %v1233_v34, 1 }
 0x20a   : > { %v1249_v13 = vmax.f32 %v919_v45, %v1248_v61  ;;  %v1228_v45 = vrot.slane %v1227_v25, 1 }
 0x20b   : > { %v1068_v33 = vrot.slane %v889_v57, 4  ;;  %v836_v47 = vpop.f32.mrf.mxu3  ;;  %v1066_v12 = vrot.slane %v1065_v60, 1 }
 0x20c   : > { %v837_v7 = vadd.f32 %v2249_v22, %v836_v47  ;;  %v1250_v32 = vrot.slane %v1249_v13, 2  ;;  %v1247_v47 = vmax.f32 %v1245_v43, %v1246_v56 }
 0x20d   : > { %v1069_v11 = vmax.f32 %v889_v57, %v1068_v33  ;;  %v1067_v31 = vmax.f32 %v1065_v60, %v1066_v12  ;;  %v1229_v57 = vmax.f32 %v1227_v25, %v1228_v45  ;;  %v1235_v60 = vmax.f32 %v1233_v34, %v1234_v50 }
 0x20e   : > { %v920_v14 = vmax.f32 %v837_v7, 0.0  ;;  %v2252_v15 = vpop.f32.mrf.mxu1  ;;  %v1251_v48 = vmax.f32 %v1249_v13, %v1250_v32 }
 0x20f   : > { %v1070_v19 = vrot.slane %v1069_v11, 2  ;;  %v1404_v46 = vsel %vm1388_vm5, %v1067_v31, %v1403_v42  ;;  %v1427_v2 = vsel %vm1378_vm0, %v1229_v57, %v1223_v63  ;;  %v747_v20 = vadd.f32 %v2249_v22, %v2252_v15 }
 0x210   : > { %v1254_v26 = vrot.slane %v920_v14, 4  ;;  %v1252_v58 = vrot.slane %v1251_v48, 1  ;;  %v1428_v8 = vsel %vm1380_vm1, %v1235_v60, %v1427_v2 }
 0x211   : > { %v1071_v30 = vmax.f32 %v1069_v11, %v1070_v19  ;;  %v1429_v10 = vsel %vm1382_vm2, %v1241_v1, %v1428_v8 }
 0x212   : > { %v1255_v35 = vmax.f32 %v920_v14, %v1254_v26  ;;  %v1253_v3 = vmax.f32 %v1251_v48, %v1252_v58  ;;  %v1430_v4 = vsel %vm1384_vm3, %v1247_v47, %v1429_v10  ;;  %v890_v26 = vmax.f32 %v747_v20, 0.0 }
 0x213   : > { %v1072_v38 = vrot.slane %v1071_v30, 1  ;;  %v839_v21 = vpop.f32.mrf.mxu3 }
 0x214   : > { %v1256_v40 = vrot.slane %v1255_v35, 2  ;;  %v840_v41 = vadd.f32 %v2249_v22, %v839_v21  ;;  %v1431_v12 = vsel %vm1386_vm4, %v1253_v3, %v1430_v4  ;;  %v1074_v31 = vrot.slane %v890_v26, 4 }
 0x215   : > { %v1073_v44 = vmax.f32 %v1071_v30, %v1072_v38 }
 0x216   : > { %v921_v0 = vmax.f32 %v840_v41, 0.0  ;;  %v749_v49 = vpop.f32.mrf.mxu1  ;;  %v1257_v52 = vmax.f32 %v1255_v35, %v1256_v40  ;;  %v1075_v21 = vmax.f32 %v890_v26, %v1074_v31 }
 0x217   : > { %v1405_v51 = vsel %vm1390_vm6, %v1073_v44, %v1404_v46  ;;  %v750_v24 = vadd.f32 %v2249_v22, %v749_v49 }
 0x218   : > { %1451 = vst [vmem:[%s2164_s13 + $0x10] sm:$0xff] %v1405_v51  ;;  %v1260_v55 = vrot.slane %v921_v0, 4  ;;  %v1258_v61 = vrot.slane %v1257_v52, 1  ;;  %v1076_v45 = vrot.slane %v1075_v21, 2 }
 0x219   : > { %v891_v30 = vmax.f32 %v750_v24, 0.0 }
 0x21a   : > { %v1261_v59 = vmax.f32 %v921_v0, %v1260_v55  ;;  %v1259_v9 = vmax.f32 %v1257_v52, %v1258_v61 }
 0x21b   : > { %v842_v62 = vpop.f32.mrf.mxu3  ;;  %v1080_v34 = vrot.slane %v891_v30, 4 }
 0x21c   : > { %v1262_v33 = vrot.slane %v1261_v59, 2  ;;  %v1432_v14 = vsel %vm1388_vm5, %v1259_v9, %v1431_v12  ;;  %v843_v46 = vadd.f32 %v2249_v22, %v842_v62 }
 0x21d   : > { %v1081_v41 = vmax.f32 %v891_v30, %v1080_v34 }
 0x21e   : > { %v1263_v5 = vmax.f32 %v1261_v59, %v1262_v33  ;;  %v752_v7 = vpop.f32.mrf.mxu1  ;;  %v1077_v59 = vmax.f32 %v1075_v21, %v1076_v45  ;;  %v922_v60 = vmax.f32 %v843_v46, 0.0 }
 0x21f   : > { %v753_v25 = vadd.f32 %v2249_v22, %v752_v7  ;;  %v1082_v52 = vrot.slane %v1081_v41, 2 }
 0x220   : > { %v1264_v11 = vrot.slane %v1263_v5, 1  ;;  %v1266_v4 = vrot.slane %v922_v60, 4 }
 0x221   : > { %v892_v32 = vmax.f32 %v753_v25, 0.0  ;;  %v1083_v47 = vmax.f32 %v1081_v41, %v1082_v52 }
 0x222   : > { %v1265_v13 = vmax.f32 %v1263_v5, %v1264_v11  ;;  %v1078_v11 = vrot.slane %v1077_v59, 1 }
 0x223   : > { %v845_v16 = vpop.f32.mrf.mxu3  ;;  %v1086_v39 = vrot.slane %v892_v32, 4  ;;  %v1084_v20 = vrot.slane %v1083_v47, 1 }
 0x224   : > { %v1433_v17 = vsel %vm1390_vm6, %v1265_v13, %v1432_v14  ;;  %v846_v43 = vadd.f32 %v2249_v22, %v845_v16  ;;  %v1079_v30 = vmax.f32 %v1077_v59, %v1078_v11 }
 0x225   : > { %1455 = vst [vmem:[%s2164_s13 + $0x30] sm:$0xff] %v1433_v17  ;;  %v1087_v48 = vmax.f32 %v892_v32, %v1086_v39 }
 0x226   : > { %v755_v18 = vpop.f32.mrf.mxu1  ;;  %v923_v55 = vmax.f32 %v846_v43, 0.0 }
 0x227   : > { %v756_v27 = vadd.f32 %v2249_v22, %v755_v18  ;;  %v1088_v61 = vrot.slane %v1087_v48, 2 }
 0x228   : > { %v1272_v7 = vrot.slane %v923_v55, 4 }
 0x229   : > { %v893_v36 = vmax.f32 %v756_v27, 0.0  ;;  %v1089_v12 = vmax.f32 %v1087_v48, %v1088_v61 }
 0x22a   : > { %v1273_v26 = vmax.f32 %v923_v55, %v1272_v7 }
 0x22b   : > { %v848_v19 = vpop.f32.mrf.mxu3  ;;  %v1092_v6 = vrot.slane %v893_v36, 4 }
 0x22c   : > { %v849_v50 = vadd.f32 %v2249_v22, %v848_v19 }
 0x22d   : > { %v1093_v49 = vmax.f32 %v893_v36, %v1092_v6 }
 0x22e   : > { %v758_v23 = vpop.f32.mrf.mxu1  ;;  %v924_v63 = vmax.f32 %v849_v50, 0.0 }
 0x22f   : > { %v759_v29 = vadd.f32 %v2249_v22, %v758_v23  ;;  %v1094_v62 = vrot.slane %v1093_v49, 2 }
 0x230   : > { %v1278_v17 = vrot.slane %v924_v63, 4 }
 0x231   : > { %v894_v15 = vmax.f32 %v759_v29, 0.0  ;;  %v1095_v16 = vmax.f32 %v1093_v49, %v1094_v62  ;;  %v1090_v29 = vrot.slane %v1089_v12, 1 }
 0x233   : > { %v851_v28 = vpop.f32.mrf.mxu3  ;;  %v1098_v42 = vrot.slane %v894_v15, 4  ;;  %v1096_v36 = vrot.slane %v1095_v16, 1 }
 0x234   : > { %v852_v54 = vadd.f32 %v2249_v22, %v851_v28 }
 0x235   : > { %v1099_v53 = vmax.f32 %v894_v15, %v1098_v42  ;;  %v1097_v49 = vmax.f32 %v1095_v16, %v1096_v36 }
 0x236   : > { %v761_v35 = vpop.f32.mrf.mxu1  ;;  %v925_v3 = vmax.f32 %v852_v54, 0.0 }
 0x237   : > { %v762_v37 = vadd.f32 %v2249_v22, %v761_v35  ;;  %v1100_v2 = vrot.slane %v1099_v53, 2  ;;  %v1267_v35 = vmax.f32 %v922_v60, %v1266_v4 }
 0x238   : > { %v1284_v24 = vrot.slane %v925_v3, 4 }
 0x239   : > { %v895_v38 = vmax.f32 %v762_v37, 0.0  ;;  %v1101_v23 = vmax.f32 %v1099_v53, %v1100_v2  ;;  %v1279_v37 = vmax.f32 %v924_v63, %v1278_v17 }
 0x23a   : > { %v1285_v39 = vmax.f32 %v925_v3, %v1284_v24 }
 0x23b   : > { %v854_v40 = vpop.f32.mrf.mxu3  ;;  %v1104_v44 = vrot.slane %v895_v38, 4  ;;  %v1102_v21 = vrot.slane %v1101_v23, 1  ;;  %v1280_v50 = vrot.slane %v1279_v37, 2 }
 0x23c   : > { %v855_v57 = vadd.f32 %v2249_v22, %v854_v40  ;;  %v1274_v40 = vrot.slane %v1273_v26, 2  ;;  %v1286_v54 = vrot.slane %v1285_v39, 2 }
 0x23d   : > { %v1105_v56 = vmax.f32 %v895_v38, %v1104_v44  ;;  %v1085_v38 = vmax.f32 %v1083_v47, %v1084_v20  ;;  %v1091_v44 = vmax.f32 %v1089_v12, %v1090_v29  ;;  %v1103_v53 = vmax.f32 %v1101_v23, %v1102_v21 }
 0x23e   : > { %v764_v0 = vpop.f32.mrf.mxu1  ;;  %v926_v9 = vmax.f32 %v855_v57, 0.0  ;;  %v1281_v47 = vmax.f32 %v1279_v37, %v1280_v50  ;;  %v1287_v7 = vmax.f32 %v1285_v39, %v1286_v54 }
 0x23f   : > { %v765_v51 = vadd.f32 %v2249_v22, %v764_v0  ;;  %v1106_v8 = vrot.slane %v1105_v56, 2  ;;  %v1268_v0 = vrot.slane %v1267_v35, 2  ;;  %v1406_v52 = vsel %vm1378_vm0, %v1085_v38, %v1079_v30 }
 0x240   : > { %v1290_v27 = vrot.slane %v926_v9, 4  ;;  %v1407_v60 = vsel %vm1380_vm1, %v1091_v44, %v1406_v52  ;;  %v1282_v17 = vrot.slane %v1281_v47, 1  ;;  %v1288_v23 = vrot.slane %v1287_v7, 1 }
 0x241   : > { %v896_v58 = vmax.f32 %v765_v51, 0.0  ;;  %v1107_v25 = vmax.f32 %v1105_v56, %v1106_v8  ;;  %v1275_v56 = vmax.f32 %v1273_v26, %v1274_v40 }
 0x242   : > { %v1291_v42 = vmax.f32 %v926_v9, %v1290_v27 }
 0x243   : > { %v1110_v1 = vrot.slane %v896_v58, 4  ;;  %v857_v33 = vpop.f32.mrf.mxu3  ;;  %v1108_v41 = vrot.slane %v1107_v25, 1  ;;  %v1276_v12 = vrot.slane %v1275_v56, 1 }
 0x244   : > { %v858_v5 = vadd.f32 %v2249_v22, %v857_v33  ;;  %v1408_v33 = vsel %vm1382_vm2, %v1097_v49, %v1407_v60 }
 0x245   : > { %v1111_v10 = vmax.f32 %v896_v58, %v1110_v1  ;;  %v1109_v57 = vmax.f32 %v1107_v25, %v1108_v41  ;;  %v1292_v58 = vrot.slane %v1291_v42, 2  ;;  %v1269_v1 = vmax.f32 %v1267_v35, %v1268_v0 }
 0x246   : > { %v927_v13 = vmax.f32 %v858_v5, 0.0  ;;  %v767_v14 = vpop.f32.mrf.mxu1  ;;  %v1409_v5 = vsel %vm1384_vm3, %v1103_v53, %v1408_v33 }
 0x247   : > { %v1112_v18 = vrot.slane %v1111_v10, 2  ;;  %v768_v19 = vadd.f32 %v2249_v22, %v767_v14  ;;  %v1293_v11 = vmax.f32 %v1291_v42, %v1292_v58  ;;  %v1270_v20 = vrot.slane %v1269_v1, 1 }
 0x248   : > { %v1296_v32 = vrot.slane %v927_v13, 4 }
 0x249   : > { %v897_v28 = vmax.f32 %v768_v19, 0.0  ;;  %v1113_v31 = vmax.f32 %v1111_v10, %v1112_v18  ;;  %v1410_v10 = vsel %vm1386_vm4, %v1109_v57, %v1409_v5  ;;  %v1294_v26 = vrot.slane %v1293_v11, 1 }
 0x24a   : > { %v1297_v46 = vmax.f32 %v927_v13, %v1296_v32  ;;  %v1271_v29 = vmax.f32 %v1269_v1, %v1270_v20 }
 0x24b   : > { %v1116_v34 = vrot.slane %v897_v28, 4  ;;  %v860_v15 = vpop.f32.mrf.mxu3  ;;  %v1114_v45 = vrot.slane %v1113_v31, 1  ;;  %v1295_v35 = vmax.f32 %v1293_v11, %v1294_v26 }
 0x24c   : > { %v861_v6 = vadd.f32 %v2249_v22, %v860_v15  ;;  %v1298_v62 = vrot.slane %v1297_v46, 2 }
 0x24d   : > { %v1117_v43 = vmax.f32 %v897_v28, %v1116_v34  ;;  %v1115_v61 = vmax.f32 %v1113_v31, %v1114_v45  ;;  %v1283_v28 = vmax.f32 %v1281_v47, %v1282_v17  ;;  %v1289_v31 = vmax.f32 %v1287_v7, %v1288_v23 }
 0x24e   : > { %v928_v48 = vmax.f32 %v861_v6, 0.0  ;;  %v1299_v14 = vmax.f32 %v1297_v46, %v1298_v62 }
 0x24f   : > { %v1118_v51 = vrot.slane %v1117_v43, 2  ;;  %v1411_v13 = vsel %vm1388_vm5, %v1115_v61, %v1410_v10 }
 0x250   : > { %v1302_v55 = vrot.slane %v928_v48, 4  ;;  %v1300_v25 = vrot.slane %v1299_v14, 1 }
 0x251   : > { %v1119_v59 = vmax.f32 %v1117_v43, %v1118_v51 }
 0x252   : > { %v1303_v63 = vmax.f32 %v928_v48, %v1302_v55  ;;  %v1301_v37 = vmax.f32 %v1299_v14, %v1300_v25 }
 0x253   : > { %v1120_v2 = vrot.slane %v1119_v59, 1  ;;  %v863_v3 = vpop.f32.mrf.mxu3 }
 0x254   : > { %v1304_v8 = vrot.slane %v1303_v63, 2  ;;  %v864_v9 = vadd.f32 %v2249_v22, %v863_v3  ;;  %v1277_v22 = vmax.f32 %v1275_v56, %v1276_v12 }
 0x255   : > { %v1121_v4 = vmax.f32 %v1119_v59, %v1120_v2 }
 0x256   : > { %v929_v16 = vmax.f32 %v864_v9, 0.0  ;;  %v1305_v19 = vmax.f32 %v1303_v63, %v1304_v8  ;;  %v1434_v36 = vsel %vm1378_vm0, %v1277_v22, %v1271_v29 }
 0x257   : > { %v1412_v18 = vsel %vm1390_vm6, %v1121_v4, %v1411_v13  ;;  %v1435_v15 = vsel %vm1380_vm1, %v1283_v28, %v1434_v36 }
 0x258   : > { %1452 = vst [vmem:[%s2164_s13 + $0x18] sm:$0xff] %v1412_v18  ;;  %v1308_v24 = vrot.slane %v929_v16, 4  ;;  %v1306_v30 = vrot.slane %v1305_v19, 1  ;;  %v1436_v21 = vsel %vm1382_vm2, %v1289_v31, %v1435_v15 }
 0x259   : > { %v1437_v6 = vsel %vm1384_vm3, %v1295_v35, %v1436_v21 }
 0x25a   : > { %v1309_v27 = vmax.f32 %v929_v16, %v1308_v24  ;;  %v1307_v38 = vmax.f32 %v1305_v19, %v1306_v30  ;;  %v1438_v40 = vsel %vm1386_vm4, %v1301_v37, %v1437_v6 }
 0x25c   : > { %v1310_v32 = vrot.slane %v1309_v27, 2  ;;  %v1439_v42 = vsel %vm1388_vm5, %v1307_v38, %v1438_v40 }
 0x25e   : > { %v1311_v34 = vmax.f32 %v1309_v27, %v1310_v32 }
 0x260   : > { %v1312_v39 = vrot.slane %v1311_v34, 1 }
 0x262   : > { %v1313_v41 = vmax.f32 %v1311_v34, %v1312_v39 }
 0x264   : > { %v1440_v43 = vsel %vm1390_vm6, %v1313_v41, %v1439_v42 }
 0x265   : > { %1456 = vst [vmem:[%s2164_s13 + $0x38] sm:$0xff] %v1440_v43 }
 0x266   : > { %1809 = shalt.err (!%p1806_p10)
}
 0x267   : > { %s1858_s8 = smov 128   ;;  %s1859_s13 = smov 8  }
 0x268   : > { %1627 = dma.vmem_to_hbm [thread:$0]  (%p1961_p0), %s1471_s22, 1024, %s1473_s28, %s1458_s24, %s1858_s8, %s1858_s8, %s1859_s13  }
 0x269 PF: > { %p1649_p11 = scmp.ge.s32.totalorder %s1852_s21, 2  ;;  %s1487_s6 = sand.u32 1, %s1840_s18  }
 0x26a   : > { %s1488_s7 = scalar_lea.sflag [#allocation4], %s1487_s6 }
 0x26b   : > { %p1641_p12 = pnand %p1649_p11, %p1925_p6 }
 0x26d   : > { %p1642_p13 = pneg %p1641_p12 }
 0x26f   : > { %1835 = dma.done.wait (%p1642_p13), %s1488_s7, 1024  }
 0x270   : > { %1837 = vsyncadd (%p1642_p13), %s1488_s7, 4294966272  ;;  %p19_p3 = scmp.ge.s32.totalorder %s1951_s14, 6   ;;  %s2350_s18 = smov %s1844_s19 }
 0x271   : > { %s2351_s19 = smov %s1848_s20  ;;  %s2352_s20 = smov %s1967_s23 }
 0x272   : > { %s2353_s21 = smov %s1951_s14  ;;  %21 = sbr.rel (!%p19_p3) target bundleno = 6 (0x6), region = 93 }
 0x277   :  { %1494 = vsyncpa [#allocation3], 1 }
 0x278   :  { %1496 = vsyncpa [#allocation3 + $0x1], 1 }
 0x279   :  { %1497 = vsyncpa [#allocation6], 1 }
 0x27a   :  { %1498 = vsyncpa [#allocation4], 1 }
 0x27b   :  { %1500 = vsyncpa [#allocation4 + $0x1], 1 }

</bundles_post_ra>
